<compile_context>
chip_gen: v7x
topology: tpu7x:2x2x1
jax: 0.10.0
libtpu: 0.0.40
codegen_flags: <defaults>
</compile_context>

<pallas_src>
import math

import jax
import jax.numpy as jnp
from jax.experimental import pallas as pl
from jax.experimental.pallas import tpu as pltpu


def _round_up(v, m):
    return ((v + m - 1) // m) * m


def _vmem_capacity_bytes():
    try:
        return int(pltpu.get_tpu_info().vmem_capacity_bytes)
    except Exception:
        try:
            kind = jax.devices()[0].device_kind.lower()
        except Exception:
            kind = ""
        is_v7 = any(t in kind for t in ("v7", "tpu7", "7x"))
        return (64 << 20) if is_v7 else (128 << 20)


def _has_two_tensorcores():
    try:
        kind = jax.devices()[0].device_kind.lower()
    except Exception:
        return False
    return any(t in kind for t in ("v7", "tpu7", "7x"))


def _plan_tiles(N, Cp, Hp, out_itemsize, budget, two_tc):
    """Pick the (tm, tn) row / hidden-column tiles that fit the VMEM budget."""

    def bytes_needed(tm, tn):
        w2_bufs = 1 if tn >= Hp else 2      # grid-invariant -> single-buffered
        return (Cp * Hp * 2                          # W1^T (bf16, single-buffered)
                + Hp * 4 + w2_bufs * tn * 4          # b1 / b2 (f32)
                + w2_bufs * Hp * tn * 2              # (W2^T + I) column tile (bf16)
                + tm * Hp * 2                        # post-relu h scratch (bf16)
                + 2 * tm * Cp * 2                    # x row tile (bf16, dbl-buffered)
                + 2 * tm * tn * out_itemsize)        # out tile (double-buffered)

    # Column tile over the hidden/output dim: prefer the full width (weights are
    # then grid-invariant and fetched once); shrink only if that can't fit VMEM.
    tn = 128
    for cand in [Hp] + [t for t in (4096, 2048, 1024, 512, 256, 128) if t < Hp]:
        if bytes_needed(16, cand) <= budget:
            tn = cand
            break

    # Row tile: largest candidate that fits (fewer grid steps, bigger DMAs;
    # mem-bound kernels reach ~85% of HBM roofline at 512-1024-row blocks).
    n16 = max(16, _round_up(N, 16))
    cands = sorted({1024, 768, 512, 384, 256, 128, 64, 32, 16, min(n16, 1024)},
                   reverse=True)
    tm = 16
    for cand in cands:
        if cand <= n16 and bytes_needed(cand, tn) <= budget:
            tm = cand
            break

    # Only v7x has 2 TensorCores: give each one at least one row tile there.
    # On single-TC v5e/v6e the grid is a serial loop, so keep tm as large as fits.
    if two_tc and N > 16:
        while -(-N // tm) < 2 and tm > 16:
            tm = max(16, _round_up(tm // 2, 16))

    return tm, tn


def _ffn_kernel(x_ref, w1t_ref, b1_ref, w2ti_ref, b2_ref, o_ref, h_ref):
    """One (row-tile i, hidden-column-tile j) grid step.

    Eval-mode dropout (p=0.5) on the sparse input is identity -> no-op here.
    """
    # lin1 + relu over the full (padded) hidden width, once per row tile.
    @pl.when(pl.program_id(1) == 0)
    def _():
        h = jnp.dot(x_ref[...], w1t_ref[...],
                    preferred_element_type=jnp.float32) + b1_ref[...]
        h_ref[...] = jnp.maximum(h, 0.0).astype(h_ref.dtype)

    # lin2 + residual: the identity is folded into W2^T, so one MXU dot yields
    # lin2(h) + h; accumulate in f32, add the f32 bias, cast once for the store.
    out = jnp.dot(h_ref[...], w2ti_ref[...],
                  preferred_element_type=jnp.float32) + b2_ref[...]
    o_ref[...] = out.astype(o_ref.dtype)


def bga_sparse_ffn(x, w1, b1, w2, b2, *, out_dtype=jnp.float32):
    """BGA_SparseFFN forward (eval mode).

    x: [N, C_in] dense view of the sparse-COO input (eval dropout is identity).
    w1: [H, C_in], b1: [H], w2: [H, H], b2: [H]  ->  [N, H] in `out_dtype`.

    Operands are cast to bfloat16 for the MXU (f32 accumulation), so results
    match f32 PyTorch only to bf16 precision. Pass out_dtype=jnp.bfloat16 to
    halve output writeback traffic if the consumer tolerates it.
    """
    N, C_in = x.shape
    H = w1.shape[0]
    out_dtype = jnp.dtype(out_dtype)

    Cp = _round_up(C_in, 128)
    Hp = _round_up(H, 128)

    vmem_cap = _vmem_capacity_bytes()
    budget = (vmem_cap * 3) // 4            # headroom for Mosaic internal scratch
    two_tc = _has_two_tensorcores()

    tm, tn = _plan_tiles(N, Cp, Hp, out_dtype.itemsize, budget, two_tc)
    Hp = _round_up(Hp, tn)                  # make the column tile divide evenly
    Np = _round_up(max(N, 1), tm)
    num_i, num_j = Np // tm, Hp // tn

    # Glue: densify/cast/pad at the boundary; fold the residual identity into W2^T.
    f32, bf16 = jnp.float32, jnp.bfloat16
    x_bf = jnp.pad(jnp.asarray(x, bf16), ((0, Np - N), (0, Cp - C_in)))
    w1t = jnp.pad(jnp.asarray(w1, f32).T.astype(bf16),
                  ((0, Cp - C_in), (0, Hp - H)))
    w2ti = jnp.pad((jnp.asarray(w2, f32).T + jnp.eye(H, dtype=f32)).astype(bf16),
                   ((0, Hp - H), (0, Hp - H)))
    b1p = jnp.pad(jnp.asarray(b1, f32), (0, Hp - H)).reshape(1, Hp)
    b2p = jnp.pad(jnp.asarray(b2, f32), (0, Hp - H)).reshape(1, Hp)

    flops = 2 * Np * Hp * (Cp + Hp)
    bytes_accessed = (Np * Cp * 2 + Cp * Hp * 2
                      + Hp * Hp * 2 * (num_i if num_j > 1 else 1)
                      + 2 * Hp * 4
                      + Np * Hp * out_dtype.itemsize)

    def build(single_buffer_invariants):
        def invariant(shape, index_map):
            if single_buffer_invariants:
                return pl.BlockSpec(shape, index_map, pipeline_mode=pl.Buffered(1))
            return pl.BlockSpec(shape, index_map)

        # W2^T / b2 column tiles are grid-invariant only when the grid is 1-D in j.
        col = invariant if num_j == 1 else pl.BlockSpec
        return pl.pallas_call(
            _ffn_kernel,
            out_shape=jax.ShapeDtypeStruct((Np, Hp), out_dtype),
            grid_spec=pltpu.PrefetchScalarGridSpec(
                num_scalar_prefetch=0,
                grid=(num_i, num_j),
                in_specs=[
                    pl.BlockSpec((tm, Cp), lambda i, j: (i, 0)),   # x row tile
                    invariant((Cp, Hp), lambda i, j: (0, 0)),      # W1^T (resident)
                    invariant((1, Hp), lambda i, j: (0, 0)),       # b1   (resident)
                    col((Hp, tn), lambda i, j: (0, j)),            # W2^T + I columns
                    col((1, tn), lambda i, j: (0, j)),             # b2 columns
                ],
                out_specs=pl.BlockSpec((tm, tn), lambda i, j: (i, j)),
                scratch_shapes=[pltpu.VMEM((tm, Hp), jnp.bfloat16)],  # post-relu h
            ),
            compiler_params=pltpu.CompilerParams(
                dimension_semantics=("parallel", "arbitrary"),
                vmem_limit_bytes=int(budget)),
            cost_estimate=pl.CostEstimate(
                flops=flops, transcendentals=0, bytes_accessed=bytes_accessed),
        )

    try:
        out = build(True)(x_bf, w1t, b1p, w2ti, b2p)
    except Exception:
        # Fallback for Pallas versions without single-buffer pipeline_mode support;
        # only costs extra VMEM for the then double-buffered invariant operands.
        out = build(False)(x_bf, w1t, b1p, w2ti, b2p)

    return out[:N, :H]


def _kaiming_uniform(key, shape):
    # kaiming_uniform over fan_in (matches PyG's initializer in spirit; deterministic).
    fan_in = shape[1]
    bound = math.sqrt(6.0 / fan_in)
    return jax.random.uniform(key, shape, jnp.float32, minval=-bound, maxval=bound)


def _reference_f32(x, w1, b1, w2, b2):
    h = jnp.maximum(x @ w1.T + b1, 0.0)
    return h @ w2.T + b2 + h


def _reference_bf16(x, w1, b1, w2, b2):
    """Models the kernel's bf16 operand rounding (incl. the folded residual)."""
    bf = lambda a: jnp.asarray(a, jnp.bfloat16).astype(jnp.float32)
    h = jnp.maximum(bf(x) @ bf(w1).T + b1, 0.0)
    w2i = bf(w2.T + jnp.eye(w2.shape[0], dtype=jnp.float32))
    return bf(h) @ w2i + b2


if __name__ == "__main__":
    key = jax.random.PRNGKey(0)
    N, C_IN, HIDDEN = 512, 64, 128
    k_x, k_mask, k_w1, k_w2 = jax.random.split(key, 4)

    # "Sparse" input: dense values with ~70% of entries zeroed (the sparse-COO
    # container is densified as glue before the kernel; eval dropout is identity).
    x_dense = jax.random.normal(k_x, (N, C_IN), jnp.float32)
    mask = jax.random.bernoulli(k_mask, 0.3, (N, C_IN))
    x = jnp.where(mask, x_dense, 0.0)

    # Parameters: lin1 (H, C_in), lin2 (H, H); biases zero-initialized.
    w1 = _kaiming_uniform(k_w1, (HIDDEN, C_IN))
    b1 = jnp.zeros((HIDDEN,), jnp.float32)
    w2 = _kaiming_uniform(k_w2, (HIDDEN, HIDDEN))
    b2 = jnp.zeros((HIDDEN,), jnp.float32)

    out = jax.block_until_ready(bga_sparse_ffn(x, w1, b1, w2, b2))
    assert out.shape == (N, HIDDEN)
    assert out.dtype == jnp.float32

    # Tight check vs a reference that applies the same bf16 operand rounding.
    ref_bf = _reference_bf16(x, w1, b1, w2, b2)
    assert jnp.allclose(out, ref_bf, atol=2e-3, rtol=2e-3), float(
        jnp.max(jnp.abs(out - ref_bf)))

    # Loose check vs the pure-f32 reference (covers bf16 operand quantization).
    ref_f32 = _reference_f32(x, w1, b1, w2, b2)
    assert jnp.allclose(out, ref_f32, atol=5e-2, rtol=5e-2), float(
        jnp.max(jnp.abs(out - ref_f32)))

    print("KERNEL_OK")
</pallas_src>

<mosaic_0001>
module attributes {stable_mosaic.version = 11 : i64} {
  func.func @_ffn_kernel(%arg0: i32, %arg1: i32, %arg2: memref<512x128xbf16, #tpu.memory_space<vmem>>, %arg3: memref<128x128xbf16, #tpu.memory_space<vmem>>, %arg4: memref<1x128xf32, #tpu.memory_space<vmem>>, %arg5: memref<128x128xbf16, #tpu.memory_space<vmem>>, %arg6: memref<1x128xf32, #tpu.memory_space<vmem>>, %arg7: memref<512x128xf32, #tpu.memory_space<vmem>>, %arg8: memref<512x128xbf16, #tpu.memory_space<vmem>>) attributes {dimension_semantics = [#tpu.dimension_semantics<parallel>, #tpu.dimension_semantics<arbitrary>], iteration_bounds = array<i64: 1, 1>, scalar_prefetch = 0 : i64, scratch_operands = 1 : i64, tpu.core_type = #tpu.core_type<tc>, window_params = [{transform_indices = @transform_0, window_bounds = array<i64: 512, 128>}, {pipeline_mode = #tpu.pipeline_mode<synchronous>, transform_indices = @transform_1, window_bounds = array<i64: 128, 128>}, {pipeline_mode = #tpu.pipeline_mode<synchronous>, transform_indices = @transform_2, window_bounds = array<i64: 1, 128>}, {pipeline_mode = #tpu.pipeline_mode<synchronous>, transform_indices = @transform_3, window_bounds = array<i64: 128, 128>}, {pipeline_mode = #tpu.pipeline_mode<synchronous>, transform_indices = @transform_4, window_bounds = array<i64: 1, 128>}, {transform_indices = @transform_5, window_bounds = array<i64: 512, 128>}]} {
    %c0_i32 = arith.constant 0 : i32
    %0 = arith.cmpi eq, %arg1, %c0_i32 : i32
    %1 = arith.extui %0 : i1 to i32
    %c0_i32_0 = arith.constant 0 : i32
    %2 = arith.cmpi ne, %1, %c0_i32_0 : i32
    scf.if %2 {
      %c0_8 = arith.constant 0 : index
      %c0_9 = arith.constant 0 : index
      %10 = vector.load %arg2[%c0_8, %c0_9] : memref<512x128xbf16, #tpu.memory_space<vmem>>, vector<512x128xbf16>
      %c0_10 = arith.constant 0 : index
      %c0_11 = arith.constant 0 : index
      %11 = vector.load %arg3[%c0_10, %c0_11] : memref<128x128xbf16, #tpu.memory_space<vmem>>, vector<128x128xbf16>
      %cst_12 = arith.constant dense<0.000000e+00> : vector<512x128xf32>
      %12 = tpu.matmul %10, %11, %cst_12 {dimension_numbers = #tpu.dot_dimension_numbers<[1], [0], [0], [1], [0, 0, 1, 1], [], []>} : vector<512x128xbf16>, vector<128x128xbf16>, vector<512x128xf32> -> vector<512x128xf32>
      %c0_13 = arith.constant 0 : index
      %c0_14 = arith.constant 0 : index
      %13 = vector.load %arg4[%c0_13, %c0_14] : memref<1x128xf32, #tpu.memory_space<vmem>>, vector<1x128xf32>
      %14 = vector.broadcast %13 : vector<1x128xf32> to vector<512x128xf32>
      %15 = arith.addf %12, %14 : vector<512x128xf32>
      %cst_15 = arith.constant 0.000000e+00 : f32
      %16 = vector.broadcast %cst_15 : f32 to vector<512x128xf32>
      %17 = arith.maximumf %15, %16 : vector<512x128xf32>
      %18 = arith.truncf %17 : vector<512x128xf32> to vector<512x128xbf16>
      %c0_16 = arith.constant 0 : index
      %c0_17 = arith.constant 0 : index
      %19 = vector.load %arg8[%c0_16, %c0_17] : memref<512x128xbf16, #tpu.memory_space<vmem>>, vector<512x128xbf16>
      tpu.vector_store %arg8[%c0_16, %c0_17], %18 {strides = array<i32>} : memref<512x128xbf16, #tpu.memory_space<vmem>>, vector<512x128xbf16>,
    } else {
    }
    %c0 = arith.constant 0 : index
    %c0_1 = arith.constant 0 : index
    %3 = vector.load %arg8[%c0, %c0_1] : memref<512x128xbf16, #tpu.memory_space<vmem>>, vector<512x128xbf16>
    %c0_2 = arith.constant 0 : index
    %c0_3 = arith.constant 0 : index
    %4 = vector.load %arg5[%c0_2, %c0_3] : memref<128x128xbf16, #tpu.memory_space<vmem>>, vector<128x128xbf16>
    %cst = arith.constant dense<0.000000e+00> : vector<512x128xf32>
    %5 = tpu.matmul %3, %4, %cst {dimension_numbers = #tpu.dot_dimension_numbers<[1], [0], [0], [1], [0, 0, 1, 1], [], []>} : vector<512x128xbf16>, vector<128x128xbf16>, vector<512x128xf32> -> vector<512x128xf32>
    %c0_4 = arith.constant 0 : index
    %c0_5 = arith.constant 0 : index
    %6 = vector.load %arg6[%c0_4, %c0_5] : memref<1x128xf32, #tpu.memory_space<vmem>>, vector<1x128xf32>
    %7 = vector.broadcast %6 : vector<1x128xf32> to vector<512x128xf32>
    %8 = arith.addf %5, %7 : vector<512x128xf32>
    %c0_6 = arith.constant 0 : index
    %c0_7 = arith.constant 0 : index
    %9 = vector.load %arg7[%c0_6, %c0_7] : memref<512x128xf32, #tpu.memory_space<vmem>>, vector<512x128xf32>
    tpu.vector_store %arg7[%c0_6, %c0_7], %8 {strides = array<i32>} : memref<512x128xf32, #tpu.memory_space<vmem>>, vector<512x128xf32>,
    return
  }
  func.func @transform_0(%arg0: i32, %arg1: i32) -> (i32, i32) {
    %c0_i32 = arith.constant 0 : i32
    %c0_i32_0 = arith.constant 0 : i32
    return %arg0, %c0_i32 : i32, i32
  }
  func.func @transform_1(%arg0: i32, %arg1: i32) -> (i32, i32) {
    %c0_i32 = arith.constant 0 : i32
    %c0_i32_0 = arith.constant 0 : i32
    %c0_i32_1 = arith.constant 0 : i32
    return %c0_i32, %c0_i32_0 : i32, i32
  }
  func.func @transform_2(%arg0: i32, %arg1: i32) -> (i32, i32) {
    %c0_i32 = arith.constant 0 : i32
    %c0_i32_0 = arith.constant 0 : i32
    %c0_i32_1 = arith.constant 0 : i32
    return %c0_i32, %c0_i32_0 : i32, i32
  }
  func.func @transform_3(%arg0: i32, %arg1: i32) -> (i32, i32) {
    %c0_i32 = arith.constant 0 : i32
    %c0_i32_0 = arith.constant 0 : i32
    return %c0_i32, %arg1 : i32, i32
  }
  func.func @transform_4(%arg0: i32, %arg1: i32) -> (i32, i32) {
    %c0_i32 = arith.constant 0 : i32
    %c0_i32_0 = arith.constant 0 : i32
    return %c0_i32, %arg1 : i32, i32
  }
  func.func @transform_5(%arg0: i32, %arg1: i32) -> (i32, i32) {
    %c0_i32 = arith.constant 0 : i32
    return %arg0, %arg1 : i32, i32
  }
}

module attributes {stable_mosaic.version = 11 : i64} {
  func.func @_ffn_kernel(%arg0: i32, %arg1: i32, %arg2: memref<512x128xbf16, #tpu.memory_space<vmem>>, %arg3: memref<128x128xbf16, #tpu.memory_space<vmem>>, %arg4: memref<1x128xf32, #tpu.memory_space<vmem>>, %arg5: memref<128x128xbf16, #tpu.memory_space<vmem>>, %arg6: memref<1x128xf32, #tpu.memory_space<vmem>>, %arg7: memref<512x128xf32, #tpu.memory_space<vmem>>, %arg8: memref<512x128xbf16, #tpu.memory_space<vmem>>) attributes {dimension_semantics = [#tpu.dimension_semantics<parallel>, #tpu.dimension_semantics<arbitrary>], iteration_bounds = array<i64: 1, 1>, scalar_prefetch = 0 : i64, scratch_operands = 1 : i64, tpu.core_type = #tpu.core_type<tc>, window_params = [{transform_indices = @transform_0, window_bounds = array<i64: 512, 128>}, {pipeline_mode = #tpu.pipeline_mode<synchronous>, transform_indices = @transform_1, window_bounds = array<i64: 128, 128>}, {pipeline_mode = #tpu.pipeline_mode<synchronous>, transform_indices = @transform_2, window_bounds = array<i64: 1, 128>}, {transform_indices = @transform_3, window_bounds = array<i64: 128, 128>}, {transform_indices = @transform_4, window_bounds = array<i64: 1, 128>}, {transform_indices = @transform_5, window_bounds = array<i64: 512, 128>}]} {
    %c0_i32 = arith.constant 0 : i32
    %0 = arith.cmpi eq, %arg1, %c0_i32 : i32
    %1 = arith.extui %0 : i1 to i32
    %c0_i32_0 = arith.constant 0 : i32
    %2 = arith.cmpi ne, %1, %c0_i32_0 : i32
    scf.if %2 {
      %c0_8 = arith.constant 0 : index
      %c0_9 = arith.constant 0 : index
      %10 = vector.load %arg2[%c0_8, %c0_9] : memref<512x128xbf16, #tpu.memory_space<vmem>>, vector<512x128xbf16>
      %c0_10 = arith.constant 0 : index
      %c0_11 = arith.constant 0 : index
      %11 = vector.load %arg3[%c0_10, %c0_11] : memref<128x128xbf16, #tpu.memory_space<vmem>>, vector<128x128xbf16>
      %cst_12 = arith.constant dense<0.000000e+00> : vector<512x128xf32>
      %12 = tpu.matmul %10, %11, %cst_12 {dimension_numbers = #tpu.dot_dimension_numbers<[1], [0], [0], [1], [0, 0, 1, 1], [], []>} : vector<512x128xbf16>, vector<128x128xbf16>, vector<512x128xf32> -> vector<512x128xf32>
      %c0_13 = arith.constant 0 : index
      %c0_14 = arith.constant 0 : index
      %13 = vector.load %arg4[%c0_13, %c0_14] : memref<1x128xf32, #tpu.memory_space<vmem>>, vector<1x128xf32>
      %14 = vector.broadcast %13 : vector<1x128xf32> to vector<512x128xf32>
      %15 = arith.addf %12, %14 : vector<512x128xf32>
      %cst_15 = arith.constant 0.000000e+00 : f32
      %16 = vector.broadcast %cst_15 : f32 to vector<512x128xf32>
      %17 = arith.maximumf %15, %16 : vector<512x128xf32>
      %18 = arith.truncf %17 : vector<512x128xf32> to vector<512x128xbf16>
      %c0_16 = arith.constant 0 : index
      %c0_17 = arith.constant 0 : index
      %19 = vector.load %arg8[%c0_16, %c0_17] : memref<512x128xbf16, #tpu.memory_space<vmem>>, vector<512x128xbf16>
      tpu.vector_store %arg8[%c0_16, %c0_17], %18 {strides = array<i32>} : memref<512x128xbf16, #tpu.memory_space<vmem>>, vector<512x128xbf16>,
    } else {
    }
    %c0 = arith.constant 0 : index
    %c0_1 = arith.constant 0 : index
    %3 = vector.load %arg8[%c0, %c0_1] : memref<512x128xbf16, #tpu.memory_space<vmem>>, vector<512x128xbf16>
    %c0_2 = arith.constant 0 : index
    %c0_3 = arith.constant 0 : index
    %4 = vector.load %arg5[%c0_2, %c0_3] : memref<128x128xbf16, #tpu.memory_space<vmem>>, vector<128x128xbf16>
    %cst = arith.constant dense<0.000000e+00> : vector<512x128xf32>
    %5 = tpu.matmul %3, %4, %cst {dimension_numbers = #tpu.dot_dimension_numbers<[1], [0], [0], [1], [0, 0, 1, 1], [], []>} : vector<512x128xbf16>, vector<128x128xbf16>, vector<512x128xf32> -> vector<512x128xf32>
    %c0_4 = arith.constant 0 : index
    %c0_5 = arith.constant 0 : index
    %6 = vector.load %arg6[%c0_4, %c0_5] : memref<1x128xf32, #tpu.memory_space<vmem>>, vector<1x128xf32>
    %7 = vector.broadcast %6 : vector<1x128xf32> to vector<512x128xf32>
    %8 = arith.addf %5, %7 : vector<512x128xf32>
    %c0_6 = arith.constant 0 : index
    %c0_7 = arith.constant 0 : index
    %9 = vector.load %arg7[%c0_6, %c0_7] : memref<512x128xf32, #tpu.memory_space<vmem>>, vector<512x128xf32>
    tpu.vector_store %arg7[%c0_6, %c0_7], %8 {strides = array<i32>} : memref<512x128xf32, #tpu.memory_space<vmem>>, vector<512x128xf32>,
    return
  }
  func.func @transform_0(%arg0: i32, %arg1: i32) -> (i32, i32) {
    %c0_i32 = arith.constant 0 : i32
    %c0_i32_0 = arith.constant 0 : i32
    return %arg0, %c0_i32 : i32, i32
  }
  func.func @transform_1(%arg0: i32, %arg1: i32) -> (i32, i32) {
    %c0_i32 = arith.constant 0 : i32
    %c0_i32_0 = arith.constant 0 : i32
    %c0_i32_1 = arith.constant 0 : i32
    return %c0_i32, %c0_i32_0 : i32, i32
  }
  func.func @transform_2(%arg0: i32, %arg1: i32) -> (i32, i32) {
    %c0_i32 = arith.constant 0 : i32
    %c0_i32_0 = arith.constant 0 : i32
    %c0_i32_1 = arith.constant 0 : i32
    return %c0_i32, %c0_i32_0 : i32, i32
  }
  func.func @transform_3(%arg0: i32, %arg1: i32) -> (i32, i32) {
    %c0_i32 = arith.constant 0 : i32
    %c0_i32_0 = arith.constant 0 : i32
    return %c0_i32, %arg1 : i32, i32
  }
  func.func @transform_4(%arg0: i32, %arg1: i32) -> (i32, i32) {
    %c0_i32 = arith.constant 0 : i32
    %c0_i32_0 = arith.constant 0 : i32
    return %c0_i32, %arg1 : i32, i32
  }
  func.func @transform_5(%arg0: i32, %arg1: i32) -> (i32, i32) {
    %c0_i32 = arith.constant 0 : i32
    return %arg0, %arg1 : i32, i32
  }
}

</mosaic_0001>

<bundles_post_ra>
// kernel: tpu_custom_call.1
= control target key start
LH: loop header
LB: loop body
LE: loop exit
PB: predicated region body
PF: predicated region fallthrough
CT: control target
= control target key end

     0   :  { %10 = vsyncpa [#allocation4], 0  ;;  %s2057_s0 = inlined_call_operand.hbm [shape: bf16[512,128], index: 0, kind: input, shape index: {}]   ;;  %s2058_s1 = inlined_call_operand.hbm [shape: bf16[128,128], index: 1, kind: input, shape index: {}]   ;;  %s2059_s2 = inlined_call_operand.hbm [shape: f32[1,128], index: 2, kind: input, shape index: {}]   ;;  %s2060_s3 = inlined_call_operand.hbm [shape: bf16[128,128], index: 3, kind: input, shape index: {}]   ;;  %s2061_s4 = inlined_call_operand.hbm [shape: f32[1,128], index: 4, kind: input, shape index: {}]   ;;  %s2062_s5 = inlined_call_operand.hbm [shape: f32[512,128], index: 5, kind: output, shape index: {}]  }
   0x1   :  { %11 = vsyncpa [#allocation7], 0 }
   0x2   :  { %12 = vsyncpa [#allocation10], 0 }
   0x3   :  { %13 = vsyncpa [#allocation5], 0  ;;  %s1797_s18 = smov [#allocation6]   ;;  %s1798_s20 = smov [#allocation9]  }
   0x4   :  { %s31_s19 = sshll.u32 %s1797_s18, 4  ;;  %s53_s21 = sshll.u32 %s1798_s20, 4  ;;  %s32_s19 = int_to_ptr.vmem [resolvable:$true] %s31_s19  ;;  %s1837_s21 = int_to_ptr.vmem [resolvable:$true] %s53_s21 }
   0x5   :  { %s1657_s24 = scalar_lea.hbm %s2058_s1, 1024 }
   0x6   :  { %p1658_p0 = scmp.ne.s32.totalorder %s2058_s1, %s1657_s24  ;;  %p1661_p1 = scmp.lt.u32.totalorder %s1657_s24, %s2058_s1 }
   0x8   :  { %p1663_p2 = pnand %p1661_p1, %p1658_p0 }
   0xa   :  { %1666 = shalt.err (!%p1663_p2)
}
   0xb   :  { %s1667_s29 = scalar_lea.vmem %s32_s19, 1024  ;;  %p1672_p4 = scmp.lt.s32.totalorder %s32_s19, %s32_s19 }
   0xc   :  { %p1668_p3 = scmp.ne.s32.totalorder %s32_s19, %s1667_s29  ;;  %p1673_p5 = scmp.lt.s32.totalorder %s1667_s29, %s1667_s29 }
   0xe   :  { %p1674_p6 = por %p1673_p5, %p1672_p4 }
  0x10   :  { %p1675_p7 = pnand %p1674_p6, %p1668_p3 }
  0x12   :  { %1678 = shalt.err (!%p1675_p7)
}
  0x13   :  { %s1799_s30 = smov 64   ;;  %s1800_s6 = smov 4  }
  0x14   :  { %37 = dma.hbm_to_vmem [thread:$0]  %s2058_s1, 1024, %s32_s19, [#allocation7], %s1799_s30, %s1799_s30, %s1800_s6  }
  0x15   :  { %s1679_s11 = scalar_lea.hbm %s2060_s3, 1024 }
  0x16   :  { %p1680_p8 = scmp.ne.s32.totalorder %s2060_s3, %s1679_s11  ;;  %p1683_p9 = scmp.lt.u32.totalorder %s1679_s11, %s2060_s3 }
  0x18   :  { %p1685_p10 = pnand %p1683_p9, %p1680_p8 }
  0x1a   :  { %1688 = shalt.err (!%p1685_p10)
}
  0x1b   :  { %s1689_s16 = scalar_lea.vmem %s1837_s21, 1024  ;;  %p1694_p12 = scmp.lt.s32.totalorder %s1837_s21, %s1837_s21 }
  0x1c   :  { %p1690_p11 = scmp.ne.s32.totalorder %s1837_s21, %s1689_s16  ;;  %p1695_p13 = scmp.lt.s32.totalorder %s1689_s16, %s1689_s16 }
  0x1e   :  { %p1696_p0 = por %p1695_p13, %p1694_p12 }
  0x20   :  { %p1697_p1 = pnand %p1696_p0, %p1690_p11 }
  0x22   :  { %1700 = shalt.err (!%p1697_p1)
}
  0x23   :  { %59 = dma.hbm_to_vmem [thread:$0]  %s2060_s3, 1024, %s1837_s21, [#allocation10], %s1799_s30, %s1799_s30, %s1800_s6  }
  0x24   :  { %s1801_s18 = smov [#allocation3]   ;;  %s1802_s20 = smov [#allocation8]  }
  0x25   :  { %s19_s19 = sshll.u32 %s1801_s18, 4  ;;  %s44_s22 = sshll.u32 %s1802_s20, 4  ;;  %s20_s19 = int_to_ptr.vmem [resolvable:$true] %s19_s19  ;;  %s45_s22 = int_to_ptr.vmem [resolvable:$true] %s44_s22 }
  0x26   :  { %s1701_s25 = scalar_lea.hbm %s2057_s0, 4096 }
  0x27   :  { %p1702_p2 = scmp.ne.s32.totalorder %s2057_s0, %s1701_s25  ;;  %p1705_p3 = scmp.lt.u32.totalorder %s1701_s25, %s2057_s0 }
  0x29   :  { %p1707_p4 = pnand %p1705_p3, %p1702_p2 }
  0x2b   :  { %1710 = shalt.err (!%p1707_p4)
}
  0x2c   :  { %s1711_s3 = scalar_lea.vmem %s20_s19, 4096  ;;  %p1716_p6 = scmp.lt.s32.totalorder %s20_s19, %s20_s19 }
  0x2d   :  { %p1712_p5 = scmp.ne.s32.totalorder %s20_s19, %s1711_s3  ;;  %p1717_p7 = scmp.lt.s32.totalorder %s1711_s3, %s1711_s3 }
  0x2f   :  { %p1718_p8 = por %p1717_p7, %p1716_p6 }
  0x31   :  { %p1719_p9 = pnand %p1718_p8, %p1712_p5 }
  0x33   :  { %1722 = shalt.err (!%p1719_p9)
}
  0x34   :  { %25 = dma.hbm_to_vmem [thread:$0]  %s2057_s0, 4096, %s20_s19, [#allocation4], %s1799_s30, %s1799_s30, %s1800_s6  }
  0x35   :  { %s1723_s10 = scalar_lea.hbm %s2059_s2, 16 }
  0x36   :  { %p1724_p10 = scmp.ne.s32.totalorder %s2059_s2, %s1723_s10  ;;  %p1727_p11 = scmp.lt.u32.totalorder %s1723_s10, %s2059_s2 }
  0x38   :  { %p1729_p12 = pnand %p1727_p11, %p1724_p10 }
  0x3a   :  { %1732 = shalt.err (!%p1729_p12)
}
  0x3b   :  { %s1733_s15 = scalar_lea.vmem %s45_s22, 16  ;;  %s1737_s16 = scalar_lea.vmem %s45_s22, 32 }
  0x3c   :  { %p1734_p13 = scmp.ne.s32.totalorder %s45_s22, %s1733_s15  ;;  %p1738_p0 = scmp.lt.s32.totalorder %s45_s22, %s45_s22 }
  0x3d   :  { %p1739_p1 = scmp.lt.s32.totalorder %s1737_s16, %s1733_s15 }
  0x3f   :  { %p1740_p2 = por %p1739_p1, %p1738_p0 }
  0x41   :  { %p1741_p3 = pnand %p1740_p2, %p1734_p13 }
  0x43   :  { %1744 = shalt.err (!%p1741_p3)
}
  0x44   :  { %47 = dma.hbm_to_vmem [thread:$0]  %s2059_s2, 16, %s45_s22, [#allocation7]  }
  0x45   :  { %s1803_s6 = smov [#allocation11]   ;;  %s1745_s19 = scalar_lea.hbm %s2061_s4, 16 }
  0x46   :  { %s66_s1 = sshll.u32 %s1803_s6, 4  ;;  %p1746_p4 = scmp.ne.s32.totalorder %s2061_s4, %s1745_s19  ;;  %s67_s1 = int_to_ptr.vmem [resolvable:$true] %s66_s1 }
  0x47   :  { %p1749_p5 = scmp.lt.u32.totalorder %s1745_s19, %s2061_s4 }
  0x49   :  { %p1751_p6 = pnand %p1749_p5, %p1746_p4 }
  0x4b   :  { %1754 = shalt.err (!%p1751_p6)
}
  0x4c   :  { %s1755_s26 = scalar_lea.vmem %s67_s1, 16  ;;  %s1759_s2 = scalar_lea.vmem %s67_s1, 32 }
  0x4d   :  { %p1756_p7 = scmp.ne.s32.totalorder %s67_s1, %s1755_s26  ;;  %p1760_p8 = scmp.lt.s32.totalorder %s67_s1, %s67_s1 }
  0x4e   :  { %p1761_p9 = scmp.lt.s32.totalorder %s1759_s2, %s1755_s26 }
  0x50   :  { %p1762_p10 = por %p1761_p9, %p1760_p8 }
  0x52   :  { %p1763_p11 = pnand %p1762_p10, %p1756_p7 }
  0x54   :  { %1766 = shalt.err (!%p1763_p11)
}
  0x55   :  { %69 = dma.hbm_to_vmem [thread:$0]  %s2061_s4, 16, %s67_s1, [#allocation10]  }
  0x56   :  { %1789 = dma.done.wait [#allocation4], 4096  }
  0x57   :  { %1790 = vsyncadd [#allocation4], 4294963200 }
  0x58   :  { %1791 = dma.done.wait [#allocation7], 1040  }
  0x59   :  { %1792 = vsyncadd [#allocation7], 4294966256 }
  0x5a   :  { %1793 = dma.done.wait [#allocation10], 1040  }
  0x5b   :  { %1794 = vsyncadd [#allocation10], 4294966256  ;;  %v1609_v0 = vld [vmem:[#allocation6] sm:$0xff]   ;;  %v1610_v1 = vld [vmem:[#allocation6 + $0x8] sm:$0xff]   ;;  %s1804_s4 = smov [#allocation12]  }
  0x5c   :  { %1439 = vmatprep.subr.bf16.mxu0 %v1609_v0  ;;  %v1611_v2 = vld [vmem:[#allocation6 + $0x10] sm:$0xff]   ;;  %v1612_v3 = vld [vmem:[#allocation6 + $0x18] sm:$0xff]   ;;  %v1617_v4 = vld [vmem:[#allocation3] sm:$0xff]   ;;  %s1295_s28 = sshll.u32 %s1804_s4, 4  ;;  %s1296_s28 = int_to_ptr.vmem [resolvable:$true] %s1295_s28 }
  0x5d   :  { %1440 = vmatpush3.bf16.msra.mxu0 %v1609_v0  ;;  %1455 = vmatprep.mubr.bf16.mxu0 %v1617_v4  ;;  %v1613_v5 = vld [vmem:[#allocation6 + $0x20] sm:$0xff]   ;;  %v1614_v6 = vld [vmem:[#allocation6 + $0x28] sm:$0xff]   ;;  %v1615_v7 = vld [vmem:[#allocation6 + $0x30] sm:$0xff]   ;;  %s1767_s29 = scalar_lea.vmem %s1296_s28, 8192  ;;  %p1772_p13 = scmp.lt.s32.totalorder %s1296_s28, %s1296_s28 }
  0x5e   :  { %1441 = vmatprep.subr.bf16.mxu0 %v1610_v1  ;;  %v1616_v8 = vld [vmem:[#allocation6 + $0x38] sm:$0xff]   ;;  %v1618_v9 = vld [vmem:[#allocation3 + $0x8] sm:$0xff]   ;;  %v1619_v10 = vld [vmem:[#allocation3 + $0x10] sm:$0xff]   ;;  %p1768_p12 = scmp.ne.s32.totalorder %s1296_s28, %s1767_s29  ;;  %p1773_p0 = scmp.lt.s32.totalorder %s1767_s29, %s1767_s29 }
  0x5f   :  { %v1620_v11 = vld [vmem:[#allocation3 + $0x18] sm:$0xff]   ;;  %v1621_v12 = vld [vmem:[#allocation3 + $0x20] sm:$0xff]   ;;  %v1650_v14 = vld [vmem:[#allocation9 + $0x8] sm:$0xff]  }
  0x60   :  { %v1649_v13 = vld [vmem:[#allocation9] sm:$0xff]   ;;  %v1651_v15 = vld [vmem:[#allocation9 + $0x10] sm:$0xff]   ;;  %v1652_v18 = vld [vmem:[#allocation9 + $0x18] sm:$0xff]   ;;  %p1774_p1 = por %p1773_p0, %p1772_p13 }
  0x61   :  { %1442 = vmatpush3.bf16.msra.mxu0 %v1610_v1  ;;  %1519 = vmatprep.subr.bf16.mxu1 %v1649_v13  ;;  %v1622_v16 = vld [vmem:[#allocation3 + $0x28] sm:$0xff]   ;;  %v1623_v17 = vld [vmem:[#allocation3 + $0x30] sm:$0xff]   ;;  %v1624_v20 = vld [vmem:[#allocation3 + $0x38] sm:$0xff]  }
  0x62   :  { %1443 = vmatprep.subr.bf16.mxu0 %v1611_v2  ;;  %1520 = vmatpush3.bf16.msra.mxu1 %v1649_v13  ;;  %v1653_v19 = vld [vmem:[#allocation9 + $0x20] sm:$0xff]   ;;  %v1654_v22 = vld [vmem:[#allocation9 + $0x28] sm:$0xff]   ;;  %v1628_v25 = vld [vmem:[#allocation3 + $0x58] sm:$0xff]   ;;  %p1775_p2 = pnand %p1774_p1, %p1768_p12 }
  0x63   :  { %1521 = vmatprep.subr.bf16.mxu1 %v1650_v14  ;;  %v1625_v21 = vld [vmem:[#allocation3 + $0x40] sm:$0xff]   ;;  %v1626_v23 = vld [vmem:[#allocation3 + $0x48] sm:$0xff]   ;;  %v1627_v24 = vld [vmem:[#allocation3 + $0x50] sm:$0xff]  }
  0x64   :  { %v1629_v26 = vld [vmem:[#allocation3 + $0x60] sm:$0xff]   ;;  %v1630_v27 = vld [vmem:[#allocation3 + $0x68] sm:$0xff]   ;;  %v1631_v28 = vld [vmem:[#allocation3 + $0x70] sm:$0xff]  }
  0x65   :  { %1444 = vmatpush3.bf16.msra.mxu0 %v1611_v2  ;;  %v1632_v29 = vld [vmem:[#allocation3 + $0x78] sm:$0xff]   ;;  %v1633_v30 = vld [vmem:[#allocation3 + $0x80] sm:$0xff]   ;;  %v1634_v31 = vld [vmem:[#allocation3 + $0x88] sm:$0xff]  }
  0x66   :  { %1445 = vmatprep.subr.bf16.mxu0 %v1612_v3  ;;  %1522 = vmatpush3.bf16.msra.mxu1 %v1650_v14  ;;  %v1635_v32 = vld [vmem:[#allocation3 + $0x90] sm:$0xff]   ;;  %v1636_v33 = vld [vmem:[#allocation3 + $0x98] sm:$0xff]   ;;  %v1637_v34 = vld [vmem:[#allocation3 + $0xa0] sm:$0xff]  }
  0x67   :  { %1523 = vmatprep.subr.bf16.mxu1 %v1651_v15  ;;  %v1638_v35 = vld [vmem:[#allocation3 + $0xa8] sm:$0xff]   ;;  %v1639_v36 = vld [vmem:[#allocation3 + $0xb0] sm:$0xff]   ;;  %v1640_v37 = vld [vmem:[#allocation3 + $0xb8] sm:$0xff]  }
  0x68   :  { %v1655_v38 = vld [vmem:[#allocation9 + $0x30] sm:$0xff]   ;;  %v1641_v39 = vld [vmem:[#allocation3 + $0xc0] sm:$0xff]   ;;  %v1642_v41 = vld [vmem:[#allocation3 + $0xc8] sm:$0xff]  }
  0x69   :  { %1446 = vmatpush3.bf16.msra.mxu0 %v1612_v3  ;;  %v1656_v40 = vld [vmem:[#allocation9 + $0x38] sm:$0xff]   ;;  %v1643_v42 = vld [vmem:[#allocation3 + $0xd0] sm:$0xff]   ;;  %v1646_v45 = vld [vmem:[#allocation3 + $0xe8] sm:$0xff]  }
  0x6a   :  { %1447 = vmatprep.subr.bf16.mxu0 %v1613_v5  ;;  %1524 = vmatpush3.bf16.msra.mxu1 %v1651_v15  ;;  %v1644_v43 = vld [vmem:[#allocation3 + $0xd8] sm:$0xff]   ;;  %v1645_v44 = vld [vmem:[#allocation3 + $0xe0] sm:$0xff]   ;;  %v1647_v46 = vld [vmem:[#allocation3 + $0xf0] sm:$0xff]  }
  0x6b   :  { %1525 = vmatprep.subr.bf16.mxu1 %v1652_v18  ;;  %v1648_v47 = vld [vmem:[#allocation3 + $0xf8] sm:$0xff]   ;;  %v1913_v48 = vld [vmem:[#allocation8] ss:$0 sm:$0xff] }
  0x6d   :  { %1448 = vmatpush3.bf16.msra.mxu0 %v1613_v5 }
  0x6e   :  { %1449 = vmatprep.subr.bf16.mxu0 %v1614_v6  ;;  %1526 = vmatpush3.bf16.msra.mxu1 %v1652_v18 }
  0x6f   :  { %1527 = vmatprep.subr.bf16.mxu1 %v1653_v19 }
  0x71   :  { %1450 = vmatpush3.bf16.msra.mxu0 %v1614_v6 }
  0x72   :  { %1451 = vmatprep.subr.bf16.mxu0 %v1615_v7  ;;  %1528 = vmatpush3.bf16.msra.mxu1 %v1653_v19 }
  0x73   :  { %1529 = vmatprep.subr.bf16.mxu1 %v1654_v22 }
  0x75   :  { %1452 = vmatpush3.bf16.msra.mxu0 %v1615_v7 }
  0x76   :  { %1453 = vmatprep.subr.bf16.mxu0 %v1616_v8  ;;  %1530 = vmatpush3.bf16.msra.mxu1 %v1654_v22 }
  0x77   :  { %1531 = vmatprep.subr.bf16.mxu1 %v1655_v38 }
  0x79   :  { %1454 = vmatpush3.bf16.msra.mxu0 %v1616_v8 }
  0x7a   :  { %1532 = vmatpush3.bf16.msra.mxu1 %v1655_v38 }
  0x7b   :  { %1533 = vmatprep.subr.bf16.mxu1 %v1656_v40 }
  0x7c   :  { %1456 = vmatmul.mubr.bf16.vlgmr.msra.gmra.mrb[0].mxu0 %v1618_v9 }
  0x7d   :  { %1459 = vmatprep.mubr.bf16.mxu0 %v1619_v10 }
  0x7e   :  { %1534 = vmatpush3.bf16.msra.mxu1 %v1656_v40 }
  0x84   :  { %1460 = vmatmul.mubr.bf16.gmra.mrb[4].mxu0 %v1620_v11 }
  0x85   :  { %1463 = vmatprep.mubr.bf16.mxu0 %v1621_v12 }
  0x8c   :  { %1464 = vmatmul.mubr.bf16.gmra.mrb[8].mxu0 %v1622_v16 }
  0x8d   :  { %1467 = vmatprep.mubr.bf16.mxu0 %v1623_v17 }
  0x94   :  { %1468 = vmatmul.mubr.bf16.gmra.mrb[12].mxu0 %v1624_v20 }
  0x95   :  { %1471 = vmatprep.mubr.bf16.mxu0 %v1625_v21 }
  0x9c   :  { %1472 = vmatmul.mubr.bf16.gmra.mrb[16].mxu0 %v1626_v23 }
  0x9d   :  { %1475 = vmatprep.mubr.bf16.mxu0 %v1627_v24 }
  0xa4   :  { %1476 = vmatmul.mubr.bf16.gmra.mrb[20].mxu0 %v1628_v25 }
  0xa5   :  { %1479 = vmatprep.mubr.bf16.mxu0 %v1629_v26 }
  0xac   :  { %1480 = vmatmul.mubr.bf16.gmra.mrb[24].mxu0 %v1630_v27 }
  0xad   :  { %1483 = vmatprep.mubr.bf16.mxu0 %v1631_v28 }
  0xb4   :  { %1484 = vmatmul.mubr.bf16.gmra.mrb[28].mxu0 %v1632_v29 }
  0xb5   :  { %1487 = vmatprep.mubr.bf16.mxu0 %v1633_v30 }
  0xbc   :  { %1488 = vmatmul.mubr.bf16.gmra.mrb[32].mxu0 %v1634_v31 }
  0xbd   :  { %1491 = vmatprep.mubr.bf16.mxu0 %v1635_v32 }
  0xc4   :  { %1492 = vmatmul.mubr.bf16.gmra.mrb[36].mxu0 %v1636_v33 }
  0xc5   :  { %1495 = vmatprep.mubr.bf16.mxu0 %v1637_v34 }
  0xcc   :  { %1496 = vmatmul.mubr.bf16.gmra.mrb[40].mxu0 %v1638_v35 }
  0xcd   :  { %1499 = vmatprep.mubr.bf16.mxu0 %v1639_v36 }
  0xd4   :  { %1500 = vmatmul.mubr.bf16.gmra.mrb[44].mxu0 %v1640_v37 }
  0xd5   :  { %1503 = vmatprep.mubr.bf16.mxu0 %v1641_v39 }
  0xdc   :  { %1504 = vmatmul.mubr.bf16.gmra.mrb[48].mxu0 %v1642_v41 }
  0xdd   :  { %1507 = vmatprep.mubr.bf16.mxu0 %v1643_v42 }
  0xe4   :  { %1508 = vmatmul.mubr.bf16.gmra.mrb[52].mxu0 %v1644_v43 }
  0xe5   :  { %1511 = vmatprep.mubr.bf16.mxu0 %v1645_v44 }
  0xec   :  { %1512 = vmatmul.mubr.bf16.gmra.mrb[56].mxu0 %v1646_v45 }
  0xed   :  { %1515 = vmatprep.mubr.bf16.mxu0 %v1647_v46 }
  0xf4   :  { %1516 = vmatmul.mubr.bf16.gmra.mrb[60].mxu0 %v1648_v47 }
 0x14f   :  { %v1457_v49 = vpop.f32.mrb[0].mxu0 }
 0x150   :  { %v460_v50 = vadd.f32 %v1457_v49, %v1913_v48  ;;  %v451_v51 = vpop.f32.mrb[1].mxu0 }
 0x151   :  { %v452_v52 = vadd.f32 %v1913_v48, %v451_v51  ;;  %v1458_v53 = vpop.f32.mrb[2].mxu0 }
 0x152   :  { %v463_v54 = vadd.f32 %v1458_v53, %v1913_v48  ;;  %v454_v55 = vpop.f32.mrb[3].mxu0  ;;  %v708_v57 = vmax.f32 %v460_v50, 0.0 }
 0x153   :  { %v455_v56 = vadd.f32 %v1913_v48, %v454_v55  ;;  %v706_v59 = vmax.f32 %v452_v52, 0.0 }
 0x154   :  { %v709_v58 = vmax.f32 %v463_v54, 0.0 }
 0x155   :  { %v707_v60 = vmax.f32 %v455_v56, 0.0 }
 0x156   :  { %v771_v61 = vpack.c.bf16 %v709_v58, %v708_v57 }
 0x157   :  { %v1461_v62 = vpop.f32.mrb[4].mxu0  ;;  %v770_v63 = vpack.c.bf16 %v707_v60, %v706_v59 }
 0x158   :  { %v476_v0 = vadd.f32 %v1461_v62, %v1913_v48  ;;  %v467_v1 = vpop.f32.mrb[5].mxu0 }
 0x159   :  { %v468_v2 = vadd.f32 %v1913_v48, %v467_v1  ;;  %v1462_v3 = vpop.f32.mrb[6].mxu0  ;;  %1535 = vmatprep.mubr.bf16.mxu1 %v770_v63 }
 0x15a   :  { %v479_v4 = vadd.f32 %v1462_v3, %v1913_v48  ;;  %v470_v5 = vpop.f32.mrb[7].mxu0  ;;  %1536 = vmatmul.mubr.bf16.vlgmr.msra.gmra.mrb[0].mxu1 %v771_v61  ;;  %v712_v7 = vmax.f32 %v476_v0, 0.0 }
 0x15b   :  { %v471_v6 = vadd.f32 %v1913_v48, %v470_v5  ;;  %v710_v9 = vmax.f32 %v468_v2, 0.0 }
 0x15c   :  { %v713_v8 = vmax.f32 %v479_v4, 0.0 }
 0x15d   :  { %v711_v10 = vmax.f32 %v471_v6, 0.0 }
 0x15e   :  { %v773_v11 = vpack.c.bf16 %v713_v8, %v712_v7 }
 0x15f   :  { %v772_v12 = vpack.c.bf16 %v711_v10, %v710_v9  ;;  %v1465_v13 = vpop.f32.mrb[8].mxu0 }
 0x160   :  { %v492_v14 = vadd.f32 %v1465_v13, %v1913_v48  ;;  %v483_v15 = vpop.f32.mrb[9].mxu0 }
 0x161   :  { %v484_v16 = vadd.f32 %v1913_v48, %v483_v15  ;;  %v1466_v17 = vpop.f32.mrb[10].mxu0  ;;  %1539 = vmatprep.mubr.bf16.mxu1 %v772_v12 }
 0x162   :  { %v495_v18 = vadd.f32 %v1466_v17, %v1913_v48  ;;  %v486_v19 = vpop.f32.mrb[11].mxu0  ;;  %1540 = vmatmul.mubr.bf16.gmra.mrb[4].mxu1 %v773_v11  ;;  %v716_v21 = vmax.f32 %v492_v14, 0.0 }
 0x163   :  { %v487_v20 = vadd.f32 %v1913_v48, %v486_v19  ;;  %v714_v23 = vmax.f32 %v484_v16, 0.0 }
 0x164   :  { %v717_v22 = vmax.f32 %v495_v18, 0.0 }
 0x165   :  { %v715_v24 = vmax.f32 %v487_v20, 0.0 }
 0x166   :  { %v775_v25 = vpack.c.bf16 %v717_v22, %v716_v21 }
 0x167   :  { %v774_v26 = vpack.c.bf16 %v715_v24, %v714_v23  ;;  %v1469_v27 = vpop.f32.mrb[12].mxu0 }
 0x168   :  { %v508_v28 = vadd.f32 %v1469_v27, %v1913_v48  ;;  %v499_v29 = vpop.f32.mrb[13].mxu0 }
 0x169   :  { %v500_v30 = vadd.f32 %v1913_v48, %v499_v29  ;;  %v1470_v31 = vpop.f32.mrb[14].mxu0  ;;  %1543 = vmatprep.mubr.bf16.mxu1 %v774_v26 }
 0x16a   :  { %v511_v32 = vadd.f32 %v1470_v31, %v1913_v48  ;;  %v502_v33 = vpop.f32.mrb[15].mxu0  ;;  %1544 = vmatmul.mubr.bf16.gmra.mrb[8].mxu1 %v775_v25  ;;  %v720_v35 = vmax.f32 %v508_v28, 0.0 }
 0x16b   :  { %v503_v34 = vadd.f32 %v1913_v48, %v502_v33  ;;  %v718_v37 = vmax.f32 %v500_v30, 0.0 }
 0x16c   :  { %v721_v36 = vmax.f32 %v511_v32, 0.0 }
 0x16d   :  { %v719_v38 = vmax.f32 %v503_v34, 0.0 }
 0x16e   :  { %v777_v39 = vpack.c.bf16 %v721_v36, %v720_v35 }
 0x16f   :  { %v776_v40 = vpack.c.bf16 %v719_v38, %v718_v37  ;;  %v1473_v41 = vpop.f32.mrb[16].mxu0 }
 0x170   :  { %v524_v42 = vadd.f32 %v1473_v41, %v1913_v48  ;;  %v515_v43 = vpop.f32.mrb[17].mxu0 }
 0x171   :  { %v516_v44 = vadd.f32 %v1913_v48, %v515_v43  ;;  %v1474_v45 = vpop.f32.mrb[18].mxu0  ;;  %1547 = vmatprep.mubr.bf16.mxu1 %v776_v40 }
 0x172   :  { %v527_v46 = vadd.f32 %v1474_v45, %v1913_v48  ;;  %v518_v47 = vpop.f32.mrb[19].mxu0  ;;  %1548 = vmatmul.mubr.bf16.gmra.mrb[12].mxu1 %v777_v39  ;;  %v724_v50 = vmax.f32 %v524_v42, 0.0 }
 0x173   :  { %v519_v49 = vadd.f32 %v1913_v48, %v518_v47  ;;  %v722_v52 = vmax.f32 %v516_v44, 0.0 }
 0x174   :  { %v725_v51 = vmax.f32 %v527_v46, 0.0 }
 0x175   :  { %v723_v53 = vmax.f32 %v519_v49, 0.0 }
 0x176   :  { %v779_v54 = vpack.c.bf16 %v725_v51, %v724_v50 }
 0x177   :  { %v778_v55 = vpack.c.bf16 %v723_v53, %v722_v52  ;;  %v1477_v56 = vpop.f32.mrb[20].mxu0 }
 0x178   :  { %v540_v57 = vadd.f32 %v1477_v56, %v1913_v48  ;;  %v531_v58 = vpop.f32.mrb[21].mxu0 }
 0x179   :  { %v532_v59 = vadd.f32 %v1913_v48, %v531_v58  ;;  %v1478_v60 = vpop.f32.mrb[22].mxu0  ;;  %1551 = vmatprep.mubr.bf16.mxu1 %v778_v55 }
 0x17a   :  { %v543_v61 = vadd.f32 %v1478_v60, %v1913_v48  ;;  %v534_v62 = vpop.f32.mrb[23].mxu0  ;;  %1552 = vmatmul.mubr.bf16.gmra.mrb[16].mxu1 %v779_v54  ;;  %v728_v0 = vmax.f32 %v540_v57, 0.0 }
 0x17b   :  { %v535_v63 = vadd.f32 %v1913_v48, %v534_v62  ;;  %v726_v2 = vmax.f32 %v532_v59, 0.0 }
 0x17c   :  { %v729_v1 = vmax.f32 %v543_v61, 0.0 }
 0x17d   :  { %v727_v3 = vmax.f32 %v535_v63, 0.0 }
 0x17e   :  { %v781_v4 = vpack.c.bf16 %v729_v1, %v728_v0 }
 0x17f   :  { %v780_v5 = vpack.c.bf16 %v727_v3, %v726_v2  ;;  %v1481_v6 = vpop.f32.mrb[24].mxu0 }
 0x180   :  { %v556_v7 = vadd.f32 %v1481_v6, %v1913_v48  ;;  %v547_v8 = vpop.f32.mrb[25].mxu0 }
 0x181   :  { %v548_v9 = vadd.f32 %v1913_v48, %v547_v8  ;;  %v1482_v10 = vpop.f32.mrb[26].mxu0  ;;  %1555 = vmatprep.mubr.bf16.mxu1 %v780_v5 }
 0x182   :  { %v559_v11 = vadd.f32 %v1482_v10, %v1913_v48  ;;  %v550_v12 = vpop.f32.mrb[27].mxu0  ;;  %1556 = vmatmul.mubr.bf16.gmra.mrb[20].mxu1 %v781_v4  ;;  %v732_v14 = vmax.f32 %v556_v7, 0.0 }
 0x183   :  { %v551_v13 = vadd.f32 %v1913_v48, %v550_v12  ;;  %v730_v16 = vmax.f32 %v548_v9, 0.0 }
 0x184   :  { %v733_v15 = vmax.f32 %v559_v11, 0.0 }
 0x185   :  { %v731_v17 = vmax.f32 %v551_v13, 0.0 }
 0x186   :  { %v783_v18 = vpack.c.bf16 %v733_v15, %v732_v14 }
 0x187   :  { %v782_v19 = vpack.c.bf16 %v731_v17, %v730_v16  ;;  %v1485_v20 = vpop.f32.mrb[28].mxu0 }
 0x188   :  { %v572_v21 = vadd.f32 %v1485_v20, %v1913_v48  ;;  %v563_v22 = vpop.f32.mrb[29].mxu0 }
 0x189   :  { %v564_v23 = vadd.f32 %v1913_v48, %v563_v22  ;;  %v1486_v24 = vpop.f32.mrb[30].mxu0  ;;  %1559 = vmatprep.mubr.bf16.mxu1 %v782_v19 }
 0x18a   :  { %v575_v25 = vadd.f32 %v1486_v24, %v1913_v48  ;;  %v566_v26 = vpop.f32.mrb[31].mxu0  ;;  %1560 = vmatmul.mubr.bf16.gmra.mrb[24].mxu1 %v783_v18  ;;  %v736_v28 = vmax.f32 %v572_v21, 0.0 }
 0x18b   :  { %v567_v27 = vadd.f32 %v1913_v48, %v566_v26  ;;  %v734_v30 = vmax.f32 %v564_v23, 0.0 }
 0x18c   :  { %v737_v29 = vmax.f32 %v575_v25, 0.0 }
 0x18d   :  { %v735_v31 = vmax.f32 %v567_v27, 0.0 }
 0x18e   :  { %v785_v32 = vpack.c.bf16 %v737_v29, %v736_v28 }
 0x18f   :  { %v784_v33 = vpack.c.bf16 %v735_v31, %v734_v30  ;;  %v1489_v34 = vpop.f32.mrb[32].mxu0 }
 0x190   :  { %v588_v35 = vadd.f32 %v1489_v34, %v1913_v48  ;;  %v579_v36 = vpop.f32.mrb[33].mxu0 }
 0x191   :  { %v580_v37 = vadd.f32 %v1913_v48, %v579_v36  ;;  %v1490_v38 = vpop.f32.mrb[34].mxu0  ;;  %1563 = vmatprep.mubr.bf16.mxu1 %v784_v33 }
 0x192   :  { %v591_v39 = vadd.f32 %v1490_v38, %v1913_v48  ;;  %v582_v40 = vpop.f32.mrb[35].mxu0  ;;  %1564 = vmatmul.mubr.bf16.gmra.mrb[28].mxu1 %v785_v32  ;;  %v740_v42 = vmax.f32 %v588_v35, 0.0 }
 0x193   :  { %v583_v41 = vadd.f32 %v1913_v48, %v582_v40  ;;  %v738_v44 = vmax.f32 %v580_v37, 0.0 }
 0x194   :  { %v741_v43 = vmax.f32 %v591_v39, 0.0 }
 0x195   :  { %v739_v45 = vmax.f32 %v583_v41, 0.0 }
 0x196   :  { %v787_v46 = vpack.c.bf16 %v741_v43, %v740_v42 }
 0x197   :  { %v786_v47 = vpack.c.bf16 %v739_v45, %v738_v44  ;;  %v1493_v49 = vpop.f32.mrb[36].mxu0 }
 0x198   :  { %v604_v50 = vadd.f32 %v1493_v49, %v1913_v48  ;;  %v595_v51 = vpop.f32.mrb[37].mxu0 }
 0x199   :  { %v596_v52 = vadd.f32 %v1913_v48, %v595_v51  ;;  %v1494_v53 = vpop.f32.mrb[38].mxu0  ;;  %1567 = vmatprep.mubr.bf16.mxu1 %v786_v47 }
 0x19a   :  { %v607_v54 = vadd.f32 %v1494_v53, %v1913_v48  ;;  %v598_v55 = vpop.f32.mrb[39].mxu0  ;;  %1568 = vmatmul.mubr.bf16.gmra.mrb[32].mxu1 %v787_v46  ;;  %v744_v57 = vmax.f32 %v604_v50, 0.0 }
 0x19b   :  { %v599_v56 = vadd.f32 %v1913_v48, %v598_v55  ;;  %v742_v59 = vmax.f32 %v596_v52, 0.0 }
 0x19c   :  { %v745_v58 = vmax.f32 %v607_v54, 0.0 }
 0x19d   :  { %v743_v60 = vmax.f32 %v599_v56, 0.0 }
 0x19e   :  { %v789_v61 = vpack.c.bf16 %v745_v58, %v744_v57 }
 0x19f   :  { %v788_v62 = vpack.c.bf16 %v743_v60, %v742_v59  ;;  %v1497_v63 = vpop.f32.mrb[40].mxu0 }
 0x1a0   :  { %v620_v0 = vadd.f32 %v1497_v63, %v1913_v48  ;;  %v611_v1 = vpop.f32.mrb[41].mxu0 }
 0x1a1   :  { %v612_v2 = vadd.f32 %v1913_v48, %v611_v1  ;;  %v1498_v3 = vpop.f32.mrb[42].mxu0  ;;  %1571 = vmatprep.mubr.bf16.mxu1 %v788_v62 }
 0x1a2   :  { %v623_v4 = vadd.f32 %v1498_v3, %v1913_v48  ;;  %v614_v5 = vpop.f32.mrb[43].mxu0  ;;  %1572 = vmatmul.mubr.bf16.gmra.mrb[36].mxu1 %v789_v61  ;;  %v748_v7 = vmax.f32 %v620_v0, 0.0 }
 0x1a3   :  { %v615_v6 = vadd.f32 %v1913_v48, %v614_v5  ;;  %v746_v9 = vmax.f32 %v612_v2, 0.0 }
 0x1a4   :  { %v749_v8 = vmax.f32 %v623_v4, 0.0 }
 0x1a5   :  { %v747_v10 = vmax.f32 %v615_v6, 0.0 }
 0x1a6   :  { %v791_v11 = vpack.c.bf16 %v749_v8, %v748_v7 }
 0x1a7   :  { %v790_v12 = vpack.c.bf16 %v747_v10, %v746_v9  ;;  %v1501_v13 = vpop.f32.mrb[44].mxu0 }
 0x1a8   :  { %v636_v14 = vadd.f32 %v1501_v13, %v1913_v48  ;;  %v627_v15 = vpop.f32.mrb[45].mxu0 }
 0x1a9   :  { %v628_v16 = vadd.f32 %v1913_v48, %v627_v15  ;;  %v1502_v17 = vpop.f32.mrb[46].mxu0  ;;  %1575 = vmatprep.mubr.bf16.mxu1 %v790_v12 }
 0x1aa   :  { %v639_v18 = vadd.f32 %v1502_v17, %v1913_v48  ;;  %v630_v19 = vpop.f32.mrb[47].mxu0  ;;  %1576 = vmatmul.mubr.bf16.gmra.mrb[40].mxu1 %v791_v11  ;;  %v752_v21 = vmax.f32 %v636_v14, 0.0 }
 0x1ab   :  { %v631_v20 = vadd.f32 %v1913_v48, %v630_v19  ;;  %v750_v23 = vmax.f32 %v628_v16, 0.0 }
 0x1ac   :  { %v753_v22 = vmax.f32 %v639_v18, 0.0 }
 0x1ad   :  { %v751_v24 = vmax.f32 %v631_v20, 0.0  ;;  %v1979_v20 = vld [vmem:[#allocation11] ss:$0 sm:$0xff] }
 0x1ae   :  { %v793_v25 = vpack.c.bf16 %v753_v22, %v752_v21 }
 0x1af   :  { %v792_v26 = vpack.c.bf16 %v751_v24, %v750_v23  ;;  %v1505_v27 = vpop.f32.mrb[48].mxu0 }
 0x1b0   :  { %v652_v28 = vadd.f32 %v1505_v27, %v1913_v48  ;;  %v643_v29 = vpop.f32.mrb[49].mxu0 }
 0x1b1   :  { %v644_v30 = vadd.f32 %v1913_v48, %v643_v29  ;;  %v1506_v31 = vpop.f32.mrb[50].mxu0  ;;  %1579 = vmatprep.mubr.bf16.mxu1 %v792_v26 }
 0x1b2   :  { %v655_v32 = vadd.f32 %v1506_v31, %v1913_v48  ;;  %v646_v33 = vpop.f32.mrb[51].mxu0  ;;  %1580 = vmatmul.mubr.bf16.gmra.mrb[44].mxu1 %v793_v25  ;;  %v756_v35 = vmax.f32 %v652_v28, 0.0 }
 0x1b3   :  { %v647_v34 = vadd.f32 %v1913_v48, %v646_v33  ;;  %v754_v37 = vmax.f32 %v644_v30, 0.0 }
 0x1b4   :  { %v757_v36 = vmax.f32 %v655_v32, 0.0 }
 0x1b5   :  { %v755_v38 = vmax.f32 %v647_v34, 0.0 }
 0x1b6   :  { %v795_v39 = vpack.c.bf16 %v757_v36, %v756_v35 }
 0x1b7   :  { %v794_v40 = vpack.c.bf16 %v755_v38, %v754_v37  ;;  %v1509_v41 = vpop.f32.mrb[52].mxu0 }
 0x1b8   :  { %v668_v42 = vadd.f32 %v1509_v41, %v1913_v48  ;;  %v659_v43 = vpop.f32.mrb[53].mxu0 }
 0x1b9   :  { %v660_v44 = vadd.f32 %v1913_v48, %v659_v43  ;;  %v1510_v45 = vpop.f32.mrb[54].mxu0  ;;  %1583 = vmatprep.mubr.bf16.mxu1 %v794_v40 }
 0x1ba   :  { %v671_v46 = vadd.f32 %v1510_v45, %v1913_v48  ;;  %v662_v47 = vpop.f32.mrb[55].mxu0  ;;  %1584 = vmatmul.mubr.bf16.gmra.mrb[48].mxu1 %v795_v39  ;;  %v760_v50 = vmax.f32 %v668_v42, 0.0 }
 0x1bb   :  { %v663_v49 = vadd.f32 %v1913_v48, %v662_v47  ;;  %v758_v52 = vmax.f32 %v660_v44, 0.0 }
 0x1bc   :  { %v761_v51 = vmax.f32 %v671_v46, 0.0 }
 0x1bd   :  { %v759_v53 = vmax.f32 %v663_v49, 0.0 }
 0x1be   :  { %v797_v54 = vpack.c.bf16 %v761_v51, %v760_v50 }
 0x1bf   :  { %v796_v55 = vpack.c.bf16 %v759_v53, %v758_v52  ;;  %v1513_v56 = vpop.f32.mrb[56].mxu0 }
 0x1c0   :  { %v684_v57 = vadd.f32 %v1513_v56, %v1913_v48  ;;  %v675_v58 = vpop.f32.mrb[57].mxu0 }
 0x1c1   :  { %v676_v59 = vadd.f32 %v1913_v48, %v675_v58  ;;  %v1514_v60 = vpop.f32.mrb[58].mxu0  ;;  %1587 = vmatprep.mubr.bf16.mxu1 %v796_v55 }
 0x1c2   :  { %v687_v61 = vadd.f32 %v1514_v60, %v1913_v48  ;;  %v678_v62 = vpop.f32.mrb[59].mxu0  ;;  %1588 = vmatmul.mubr.bf16.gmra.mrb[52].mxu1 %v797_v54  ;;  %v764_v0 = vmax.f32 %v684_v57, 0.0 }
 0x1c3   :  { %v679_v63 = vadd.f32 %v1913_v48, %v678_v62  ;;  %v762_v2 = vmax.f32 %v676_v59, 0.0 }
 0x1c4   :  { %v765_v1 = vmax.f32 %v687_v61, 0.0 }
 0x1c5   :  { %v763_v3 = vmax.f32 %v679_v63, 0.0 }
 0x1c6   :  { %v799_v4 = vpack.c.bf16 %v765_v1, %v764_v0 }
 0x1c7   :  { %v798_v5 = vpack.c.bf16 %v763_v3, %v762_v2  ;;  %v1517_v6 = vpop.f32.mrb[60].mxu0 }
 0x1c8   :  { %v700_v7 = vadd.f32 %v1517_v6, %v1913_v48  ;;  %v691_v8 = vpop.f32.mrb[61].mxu0 }
 0x1c9   :  { %v692_v9 = vadd.f32 %v1913_v48, %v691_v8  ;;  %v1518_v10 = vpop.f32.mrb[62].mxu0  ;;  %1591 = vmatprep.mubr.bf16.mxu1 %v798_v5 }
 0x1ca   :  { %v703_v11 = vadd.f32 %v1518_v10, %v1913_v48  ;;  %v694_v12 = vpop.f32.mrb[63].mxu0  ;;  %1592 = vmatmul.mubr.bf16.gmra.mrb[56].mxu1 %v799_v4  ;;  %v768_v14 = vmax.f32 %v700_v7, 0.0 }
 0x1cb   :  { %v695_v13 = vadd.f32 %v1913_v48, %v694_v12  ;;  %v766_v16 = vmax.f32 %v692_v9, 0.0 }
 0x1cc   :  { %v769_v15 = vmax.f32 %v703_v11, 0.0 }
 0x1cd   :  { %v767_v17 = vmax.f32 %v695_v13, 0.0 }
 0x1ce   :  { %v801_v18 = vpack.c.bf16 %v769_v15, %v768_v14 }
 0x1cf   :  { %v800_v19 = vpack.c.bf16 %v767_v17, %v766_v16 }
 0x1d1   :  { %1595 = vmatprep.mubr.bf16.mxu1 %v800_v19 }
 0x1d2   :  { %1596 = vmatmul.mubr.bf16.gmra.mrb[60].mxu1 %v801_v18 }
 0x22d   :  { %v1537_v21 = vpop.f32.mrb[0].mxu1 }
 0x22e   :  { %v980_v22 = vadd.f32 %v1537_v21, %v1979_v20  ;;  %v971_v23 = vpop.f32.mrb[1].mxu1 }
 0x22f   :  { %v972_v24 = vadd.f32 %v1979_v20, %v971_v23  ;;  %v1538_v25 = vpop.f32.mrb[2].mxu1 }
 0x230   :  { %1228 = vst [vmem:[#allocation12 + $0x10] sm:$0xff] %v980_v22  ;;  %v983_v48 = vadd.f32 %v1538_v25, %v1979_v20  ;;  %v974_v26 = vpop.f32.mrb[3].mxu1 }
 0x231   :  { %1226 = vst [vmem:[#allocation12] sm:$0xff] %v972_v24  ;;  %v975_v27 = vadd.f32 %v1979_v20, %v974_v26 }
 0x232   :  { %1229 = vst [vmem:[#allocation12 + $0x18] sm:$0xff] %v983_v48 }
 0x233   :  { %1227 = vst [vmem:[#allocation12 + $0x8] sm:$0xff] %v975_v27 }
 0x235   :  { %v1541_v28 = vpop.f32.mrb[4].mxu1 }
 0x236   :  { %v996_v29 = vadd.f32 %v1541_v28, %v1979_v20  ;;  %v987_v30 = vpop.f32.mrb[5].mxu1 }
 0x237   :  { %v988_v31 = vadd.f32 %v1979_v20, %v987_v30  ;;  %v1542_v32 = vpop.f32.mrb[6].mxu1 }
 0x238   :  { %1232 = vst [vmem:[#allocation12 + $0x30] sm:$0xff] %v996_v29  ;;  %v999_v33 = vadd.f32 %v1542_v32, %v1979_v20  ;;  %v990_v34 = vpop.f32.mrb[7].mxu1 }
 0x239   :  { %1230 = vst [vmem:[#allocation12 + $0x20] sm:$0xff] %v988_v31  ;;  %v991_v35 = vadd.f32 %v1979_v20, %v990_v34 }
 0x23a   :  { %1233 = vst [vmem:[#allocation12 + $0x38] sm:$0xff] %v999_v33 }
 0x23b   :  { %1231 = vst [vmem:[#allocation12 + $0x28] sm:$0xff] %v991_v35 }
 0x23d   :  { %v1545_v36 = vpop.f32.mrb[8].mxu1 }
 0x23e   :  { %v1012_v37 = vadd.f32 %v1545_v36, %v1979_v20  ;;  %v1003_v38 = vpop.f32.mrb[9].mxu1 }
 0x23f   :  { %v1004_v39 = vadd.f32 %v1979_v20, %v1003_v38  ;;  %v1546_v40 = vpop.f32.mrb[10].mxu1 }
 0x240   :  { %1236 = vst [vmem:[#allocation12 + $0x50] sm:$0xff] %v1012_v37  ;;  %v1015_v41 = vadd.f32 %v1546_v40, %v1979_v20  ;;  %v1006_v42 = vpop.f32.mrb[11].mxu1 }
 0x241   :  { %1234 = vst [vmem:[#allocation12 + $0x40] sm:$0xff] %v1004_v39  ;;  %v1007_v43 = vadd.f32 %v1979_v20, %v1006_v42 }
 0x242   :  { %1237 = vst [vmem:[#allocation12 + $0x58] sm:$0xff] %v1015_v41 }
 0x243   :  { %1235 = vst [vmem:[#allocation12 + $0x48] sm:$0xff] %v1007_v43 }
 0x245   :  { %v1549_v44 = vpop.f32.mrb[12].mxu1 }
 0x246   :  { %v1028_v45 = vadd.f32 %v1549_v44, %v1979_v20  ;;  %v1019_v46 = vpop.f32.mrb[13].mxu1 }
 0x247   :  { %v1020_v47 = vadd.f32 %v1979_v20, %v1019_v46  ;;  %v1550_v49 = vpop.f32.mrb[14].mxu1 }
 0x248   :  { %1240 = vst [vmem:[#allocation12 + $0x70] sm:$0xff] %v1028_v45  ;;  %v1031_v50 = vadd.f32 %v1550_v49, %v1979_v20  ;;  %v1022_v51 = vpop.f32.mrb[15].mxu1 }
 0x249   :  { %1238 = vst [vmem:[#allocation12 + $0x60] sm:$0xff] %v1020_v47  ;;  %v1023_v52 = vadd.f32 %v1979_v20, %v1022_v51 }
 0x24a   :  { %1241 = vst [vmem:[#allocation12 + $0x78] sm:$0xff] %v1031_v50 }
 0x24b   :  { %1239 = vst [vmem:[#allocation12 + $0x68] sm:$0xff] %v1023_v52 }
 0x24d   :  { %v1553_v53 = vpop.f32.mrb[16].mxu1 }
 0x24e   :  { %v1044_v54 = vadd.f32 %v1553_v53, %v1979_v20  ;;  %v1035_v55 = vpop.f32.mrb[17].mxu1 }
 0x24f   :  { %v1036_v56 = vadd.f32 %v1979_v20, %v1035_v55  ;;  %v1554_v57 = vpop.f32.mrb[18].mxu1 }
 0x250   :  { %1244 = vst [vmem:[#allocation12 + $0x90] sm:$0xff] %v1044_v54  ;;  %v1047_v58 = vadd.f32 %v1554_v57, %v1979_v20  ;;  %v1038_v59 = vpop.f32.mrb[19].mxu1 }
 0x251   :  { %1242 = vst [vmem:[#allocation12 + $0x80] sm:$0xff] %v1036_v56  ;;  %v1039_v60 = vadd.f32 %v1979_v20, %v1038_v59 }
 0x252   :  { %1245 = vst [vmem:[#allocation12 + $0x98] sm:$0xff] %v1047_v58 }
 0x253   :  { %1243 = vst [vmem:[#allocation12 + $0x88] sm:$0xff] %v1039_v60 }
 0x255   :  { %v1557_v61 = vpop.f32.mrb[20].mxu1 }
 0x256   :  { %v1060_v62 = vadd.f32 %v1557_v61, %v1979_v20  ;;  %v1051_v63 = vpop.f32.mrb[21].mxu1 }
 0x257   :  { %v1052_v0 = vadd.f32 %v1979_v20, %v1051_v63  ;;  %v1558_v1 = vpop.f32.mrb[22].mxu1 }
 0x258   :  { %1248 = vst [vmem:[#allocation12 + $0xb0] sm:$0xff] %v1060_v62  ;;  %v1063_v2 = vadd.f32 %v1558_v1, %v1979_v20  ;;  %v1054_v3 = vpop.f32.mrb[23].mxu1 }
 0x259   :  { %1246 = vst [vmem:[#allocation12 + $0xa0] sm:$0xff] %v1052_v0  ;;  %v1055_v4 = vadd.f32 %v1979_v20, %v1054_v3 }
 0x25a   :  { %1249 = vst [vmem:[#allocation12 + $0xb8] sm:$0xff] %v1063_v2 }
 0x25b   :  { %1247 = vst [vmem:[#allocation12 + $0xa8] sm:$0xff] %v1055_v4 }
 0x25d   :  { %v1561_v5 = vpop.f32.mrb[24].mxu1 }
 0x25e   :  { %v1076_v6 = vadd.f32 %v1561_v5, %v1979_v20  ;;  %v1067_v7 = vpop.f32.mrb[25].mxu1 }
 0x25f   :  { %v1068_v8 = vadd.f32 %v1979_v20, %v1067_v7  ;;  %v1562_v9 = vpop.f32.mrb[26].mxu1 }
 0x260   :  { %1252 = vst [vmem:[#allocation12 + $0xd0] sm:$0xff] %v1076_v6  ;;  %v1079_v10 = vadd.f32 %v1562_v9, %v1979_v20  ;;  %v1070_v11 = vpop.f32.mrb[27].mxu1 }
 0x261   :  { %1250 = vst [vmem:[#allocation12 + $0xc0] sm:$0xff] %v1068_v8  ;;  %v1071_v12 = vadd.f32 %v1979_v20, %v1070_v11 }
 0x262   :  { %1253 = vst [vmem:[#allocation12 + $0xd8] sm:$0xff] %v1079_v10 }
 0x263   :  { %1251 = vst [vmem:[#allocation12 + $0xc8] sm:$0xff] %v1071_v12 }
 0x265   :  { %v1565_v13 = vpop.f32.mrb[28].mxu1 }
 0x266   :  { %v1092_v14 = vadd.f32 %v1565_v13, %v1979_v20  ;;  %v1083_v15 = vpop.f32.mrb[29].mxu1 }
 0x267   :  { %v1084_v16 = vadd.f32 %v1979_v20, %v1083_v15  ;;  %v1566_v17 = vpop.f32.mrb[30].mxu1 }
 0x268   :  { %1256 = vst [vmem:[#allocation12 + $0xf0] sm:$0xff] %v1092_v14  ;;  %v1095_v18 = vadd.f32 %v1566_v17, %v1979_v20  ;;  %v1086_v19 = vpop.f32.mrb[31].mxu1 }
 0x269   :  { %1254 = vst [vmem:[#allocation12 + $0xe0] sm:$0xff] %v1084_v16  ;;  %v1087_v21 = vadd.f32 %v1979_v20, %v1086_v19 }
 0x26a   :  { %1257 = vst [vmem:[#allocation12 + $0xf8] sm:$0xff] %v1095_v18 }
 0x26b   :  { %1255 = vst [vmem:[#allocation12 + $0xe8] sm:$0xff] %v1087_v21 }
 0x26d   :  { %v1569_v22 = vpop.f32.mrb[32].mxu1 }
 0x26e   :  { %v1108_v23 = vadd.f32 %v1569_v22, %v1979_v20  ;;  %v1099_v24 = vpop.f32.mrb[33].mxu1 }
 0x26f   :  { %v1100_v25 = vadd.f32 %v1979_v20, %v1099_v24  ;;  %v1570_v48 = vpop.f32.mrb[34].mxu1 }
 0x270   :  { %1260 = vst [vmem:[#allocation12 + $0x110] sm:$0xff] %v1108_v23  ;;  %v1111_v26 = vadd.f32 %v1570_v48, %v1979_v20  ;;  %v1102_v27 = vpop.f32.mrb[35].mxu1 }
 0x271   :  { %1258 = vst [vmem:[#allocation12 + $0x100] sm:$0xff] %v1100_v25  ;;  %v1103_v28 = vadd.f32 %v1979_v20, %v1102_v27 }
 0x272   :  { %1261 = vst [vmem:[#allocation12 + $0x118] sm:$0xff] %v1111_v26 }
 0x273   :  { %1259 = vst [vmem:[#allocation12 + $0x108] sm:$0xff] %v1103_v28 }
 0x275   :  { %v1573_v29 = vpop.f32.mrb[36].mxu1 }
 0x276   :  { %v1124_v30 = vadd.f32 %v1573_v29, %v1979_v20  ;;  %v1115_v31 = vpop.f32.mrb[37].mxu1 }
 0x277   :  { %v1116_v32 = vadd.f32 %v1979_v20, %v1115_v31  ;;  %v1574_v33 = vpop.f32.mrb[38].mxu1 }
 0x278   :  { %1264 = vst [vmem:[#allocation12 + $0x130] sm:$0xff] %v1124_v30  ;;  %v1127_v34 = vadd.f32 %v1574_v33, %v1979_v20  ;;  %v1118_v35 = vpop.f32.mrb[39].mxu1 }
 0x279   :  { %1262 = vst [vmem:[#allocation12 + $0x120] sm:$0xff] %v1116_v32  ;;  %v1119_v36 = vadd.f32 %v1979_v20, %v1118_v35 }
 0x27a   :  { %1265 = vst [vmem:[#allocation12 + $0x138] sm:$0xff] %v1127_v34 }
 0x27b   :  { %1263 = vst [vmem:[#allocation12 + $0x128] sm:$0xff] %v1119_v36 }
 0x27d   :  { %v1577_v37 = vpop.f32.mrb[40].mxu1 }
 0x27e   :  { %v1140_v38 = vadd.f32 %v1577_v37, %v1979_v20  ;;  %v1131_v39 = vpop.f32.mrb[41].mxu1 }
 0x27f   :  { %v1132_v40 = vadd.f32 %v1979_v20, %v1131_v39  ;;  %v1578_v41 = vpop.f32.mrb[42].mxu1 }
 0x280   :  { %1268 = vst [vmem:[#allocation12 + $0x150] sm:$0xff] %v1140_v38  ;;  %v1143_v42 = vadd.f32 %v1578_v41, %v1979_v20  ;;  %v1134_v43 = vpop.f32.mrb[43].mxu1 }
 0x281   :  { %1266 = vst [vmem:[#allocation12 + $0x140] sm:$0xff] %v1132_v40  ;;  %v1135_v44 = vadd.f32 %v1979_v20, %v1134_v43 }
 0x282   :  { %1269 = vst [vmem:[#allocation12 + $0x158] sm:$0xff] %v1143_v42 }
 0x283   :  { %1267 = vst [vmem:[#allocation12 + $0x148] sm:$0xff] %v1135_v44 }
 0x285   :  { %v1581_v45 = vpop.f32.mrb[44].mxu1 }
 0x286   :  { %v1156_v46 = vadd.f32 %v1581_v45, %v1979_v20  ;;  %v1147_v47 = vpop.f32.mrb[45].mxu1 }
 0x287   :  { %v1148_v49 = vadd.f32 %v1979_v20, %v1147_v47  ;;  %v1582_v50 = vpop.f32.mrb[46].mxu1 }
 0x288   :  { %1272 = vst [vmem:[#allocation12 + $0x170] sm:$0xff] %v1156_v46  ;;  %v1159_v51 = vadd.f32 %v1582_v50, %v1979_v20  ;;  %v1150_v52 = vpop.f32.mrb[47].mxu1 }
 0x289   :  { %1270 = vst [vmem:[#allocation12 + $0x160] sm:$0xff] %v1148_v49  ;;  %v1151_v53 = vadd.f32 %v1979_v20, %v1150_v52 }
 0x28a   :  { %1273 = vst [vmem:[#allocation12 + $0x178] sm:$0xff] %v1159_v51 }
 0x28b   :  { %1271 = vst [vmem:[#allocation12 + $0x168] sm:$0xff] %v1151_v53 }
 0x28d   :  { %v1585_v54 = vpop.f32.mrb[48].mxu1 }
 0x28e   :  { %v1172_v55 = vadd.f32 %v1585_v54, %v1979_v20  ;;  %v1163_v56 = vpop.f32.mrb[49].mxu1 }
 0x28f   :  { %v1164_v57 = vadd.f32 %v1979_v20, %v1163_v56  ;;  %v1586_v58 = vpop.f32.mrb[50].mxu1 }
 0x290   :  { %1276 = vst [vmem:[#allocation12 + $0x190] sm:$0xff] %v1172_v55  ;;  %v1175_v59 = vadd.f32 %v1586_v58, %v1979_v20  ;;  %v1166_v60 = vpop.f32.mrb[51].mxu1 }
 0x291   :  { %1274 = vst [vmem:[#allocation12 + $0x180] sm:$0xff] %v1164_v57  ;;  %v1167_v61 = vadd.f32 %v1979_v20, %v1166_v60 }
 0x292   :  { %1277 = vst [vmem:[#allocation12 + $0x198] sm:$0xff] %v1175_v59 }
 0x293   :  { %1275 = vst [vmem:[#allocation12 + $0x188] sm:$0xff] %v1167_v61 }
 0x295   :  { %v1589_v62 = vpop.f32.mrb[52].mxu1 }
 0x296   :  { %v1188_v63 = vadd.f32 %v1589_v62, %v1979_v20  ;;  %v1179_v0 = vpop.f32.mrb[53].mxu1 }
 0x297   :  { %v1180_v1 = vadd.f32 %v1979_v20, %v1179_v0  ;;  %v1590_v2 = vpop.f32.mrb[54].mxu1 }
 0x298   :  { %1280 = vst [vmem:[#allocation12 + $0x1b0] sm:$0xff] %v1188_v63  ;;  %v1191_v3 = vadd.f32 %v1590_v2, %v1979_v20  ;;  %v1182_v4 = vpop.f32.mrb[55].mxu1 }
 0x299   :  { %1278 = vst [vmem:[#allocation12 + $0x1a0] sm:$0xff] %v1180_v1  ;;  %v1183_v5 = vadd.f32 %v1979_v20, %v1182_v4 }
 0x29a   :  { %1281 = vst [vmem:[#allocation12 + $0x1b8] sm:$0xff] %v1191_v3 }
 0x29b   :  { %1279 = vst [vmem:[#allocation12 + $0x1a8] sm:$0xff] %v1183_v5 }
 0x29d   :  { %v1593_v6 = vpop.f32.mrb[56].mxu1 }
 0x29e   :  { %v1204_v7 = vadd.f32 %v1593_v6, %v1979_v20  ;;  %v1195_v8 = vpop.f32.mrb[57].mxu1 }
 0x29f   :  { %v1196_v9 = vadd.f32 %v1979_v20, %v1195_v8  ;;  %v1594_v10 = vpop.f32.mrb[58].mxu1 }
 0x2a0   :  { %1284 = vst [vmem:[#allocation12 + $0x1d0] sm:$0xff] %v1204_v7  ;;  %v1207_v11 = vadd.f32 %v1594_v10, %v1979_v20  ;;  %v1198_v12 = vpop.f32.mrb[59].mxu1 }
 0x2a1   :  { %1282 = vst [vmem:[#allocation12 + $0x1c0] sm:$0xff] %v1196_v9  ;;  %v1199_v13 = vadd.f32 %v1979_v20, %v1198_v12 }
 0x2a2   :  { %1285 = vst [vmem:[#allocation12 + $0x1d8] sm:$0xff] %v1207_v11 }
 0x2a3   :  { %1283 = vst [vmem:[#allocation12 + $0x1c8] sm:$0xff] %v1199_v13 }
 0x2a5   :  { %v1597_v14 = vpop.f32.mrb[60].mxu1 }
 0x2a6   :  { %v1220_v15 = vadd.f32 %v1597_v14, %v1979_v20  ;;  %v1211_v16 = vpop.f32.mrb[61].mxu1 }
 0x2a7   :  { %v1212_v17 = vadd.f32 %v1979_v20, %v1211_v16  ;;  %v1598_v18 = vpop.f32.mrb[62].mxu1 }
 0x2a8   :  { %1288 = vst [vmem:[#allocation12 + $0x1f0] sm:$0xff] %v1220_v15  ;;  %v1223_v19 = vadd.f32 %v1598_v18, %v1979_v20  ;;  %v1214_v21 = vpop.f32.mrb[63].mxu1 }
 0x2a9   :  { %1286 = vst [vmem:[#allocation12 + $0x1e0] sm:$0xff] %v1212_v17  ;;  %v1215_v22 = vadd.f32 %v1979_v20, %v1214_v21 }
 0x2aa   :  { %1289 = vst [vmem:[#allocation12 + $0x1f8] sm:$0xff] %v1223_v19 }
 0x2ab   :  { %1287 = vst [vmem:[#allocation12 + $0x1e8] sm:$0xff] %v1215_v22 }
 0x2ac   :  { %1778 = shalt.err (!%p1775_p2)
}
 0x2ad   :  { %s1779_s7 = scalar_lea.hbm %s2062_s5, 8192 }
 0x2ae   :  { %p1780_p3 = scmp.ne.s32.totalorder %s2062_s5, %s1779_s7  ;;  %p1783_p4 = scmp.lt.u32.totalorder %s1779_s7, %s2062_s5 }
 0x2b0   :  { %p1785_p5 = pnand %p1783_p4, %p1780_p3 }
 0x2b2   :  { %1788 = shalt.err (!%p1785_p5)
}
 0x2b3   :  { %s1805_s12 = smov 128   ;;  %s1806_s13 = smov 8  }
 0x2b4   :  { %1301 = dma.vmem_to_hbm [thread:$0]  %s1296_s28, 8192, %s2062_s5, [#allocation5], %s1805_s12, %s1805_s12, %s1806_s13  }
 0x2b5   :  { %1795 = dma.done.wait [#allocation5], 8192  }
 0x2b6   :  { %1796 = vsyncadd [#allocation5], 4294959104 }
 0x2b7   :  { %1305 = vsyncpa [#allocation4], 1 }
 0x2b8   :  { %1306 = vsyncpa [#allocation7], 1 }
 0x2b9   :  { %1307 = vsyncpa [#allocation10], 1 }
 0x2ba   :  { %1308 = vsyncpa [#allocation5], 1 }

// kernel: tpu_custom_call.1
= control target key start
LH: loop header
LB: loop body
LE: loop exit
PB: predicated region body
PF: predicated region fallthrough
CT: control target
= control target key end

     0   :  { %10 = vsyncpa [#allocation4], 0  ;;  %s2057_s0 = inlined_call_operand.hbm [shape: bf16[512,128], index: 0, kind: input, shape index: {}]   ;;  %s2058_s1 = inlined_call_operand.hbm [shape: bf16[128,128], index: 1, kind: input, shape index: {}]   ;;  %s2059_s2 = inlined_call_operand.hbm [shape: f32[1,128], index: 2, kind: input, shape index: {}]   ;;  %s2060_s3 = inlined_call_operand.hbm [shape: bf16[128,128], index: 3, kind: input, shape index: {}]   ;;  %s2061_s4 = inlined_call_operand.hbm [shape: f32[1,128], index: 4, kind: input, shape index: {}]   ;;  %s2062_s5 = inlined_call_operand.hbm [shape: f32[512,128], index: 5, kind: output, shape index: {}]  }
   0x1   :  { %11 = vsyncpa [#allocation7], 0 }
   0x2   :  { %12 = vsyncpa [#allocation10], 0 }
   0x3   :  { %13 = vsyncpa [#allocation5], 0  ;;  %s1797_s18 = smov [#allocation6]   ;;  %s1798_s20 = smov [#allocation9]  }
   0x4   :  { %s31_s19 = sshll.u32 %s1797_s18, 4  ;;  %s53_s21 = sshll.u32 %s1798_s20, 4  ;;  %s32_s19 = int_to_ptr.vmem [resolvable:$true] %s31_s19  ;;  %s1837_s21 = int_to_ptr.vmem [resolvable:$true] %s53_s21 }
   0x5   :  { %s1657_s24 = scalar_lea.hbm %s2058_s1, 1024 }
   0x6   :  { %p1658_p0 = scmp.ne.s32.totalorder %s2058_s1, %s1657_s24  ;;  %p1661_p1 = scmp.lt.u32.totalorder %s1657_s24, %s2058_s1 }
   0x8   :  { %p1663_p2 = pnand %p1661_p1, %p1658_p0 }
   0xa   :  { %1666 = shalt.err (!%p1663_p2)
}
   0xb   :  { %s1667_s29 = scalar_lea.vmem %s32_s19, 1024  ;;  %p1672_p4 = scmp.lt.s32.totalorder %s32_s19, %s32_s19 }
   0xc   :  { %p1668_p3 = scmp.ne.s32.totalorder %s32_s19, %s1667_s29  ;;  %p1673_p5 = scmp.lt.s32.totalorder %s1667_s29, %s1667_s29 }
   0xe   :  { %p1674_p6 = por %p1673_p5, %p1672_p4 }
  0x10   :  { %p1675_p7 = pnand %p1674_p6, %p1668_p3 }
  0x12   :  { %1678 = shalt.err (!%p1675_p7)
}
  0x13   :  { %s1799_s30 = smov 64   ;;  %s1800_s6 = smov 4  }
  0x14   :  { %37 = dma.hbm_to_vmem [thread:$0]  %s2058_s1, 1024, %s32_s19, [#allocation7], %s1799_s30, %s1799_s30, %s1800_s6  }
  0x15   :  { %s1679_s11 = scalar_lea.hbm %s2060_s3, 1024 }
  0x16   :  { %p1680_p8 = scmp.ne.s32.totalorder %s2060_s3, %s1679_s11  ;;  %p1683_p9 = scmp.lt.u32.totalorder %s1679_s11, %s2060_s3 }
  0x18   :  { %p1685_p10 = pnand %p1683_p9, %p1680_p8 }
  0x1a   :  { %1688 = shalt.err (!%p1685_p10)
}
  0x1b   :  { %s1689_s16 = scalar_lea.vmem %s1837_s21, 1024  ;;  %p1694_p12 = scmp.lt.s32.totalorder %s1837_s21, %s1837_s21 }
  0x1c   :  { %p1690_p11 = scmp.ne.s32.totalorder %s1837_s21, %s1689_s16  ;;  %p1695_p13 = scmp.lt.s32.totalorder %s1689_s16, %s1689_s16 }
  0x1e   :  { %p1696_p0 = por %p1695_p13, %p1694_p12 }
  0x20   :  { %p1697_p1 = pnand %p1696_p0, %p1690_p11 }
  0x22   :  { %1700 = shalt.err (!%p1697_p1)
}
  0x23   :  { %59 = dma.hbm_to_vmem [thread:$0]  %s2060_s3, 1024, %s1837_s21, [#allocation10], %s1799_s30, %s1799_s30, %s1800_s6  }
  0x24   :  { %s1801_s18 = smov [#allocation3]   ;;  %s1802_s20 = smov [#allocation8]  }
  0x25   :  { %s19_s19 = sshll.u32 %s1801_s18, 4  ;;  %s44_s22 = sshll.u32 %s1802_s20, 4  ;;  %s20_s19 = int_to_ptr.vmem [resolvable:$true] %s19_s19  ;;  %s45_s22 = int_to_ptr.vmem [resolvable:$true] %s44_s22 }
  0x26   :  { %s1701_s25 = scalar_lea.hbm %s2057_s0, 4096 }
  0x27   :  { %p1702_p2 = scmp.ne.s32.totalorder %s2057_s0, %s1701_s25  ;;  %p1705_p3 = scmp.lt.u32.totalorder %s1701_s25, %s2057_s0 }
  0x29   :  { %p1707_p4 = pnand %p1705_p3, %p1702_p2 }
  0x2b   :  { %1710 = shalt.err (!%p1707_p4)
}
  0x2c   :  { %s1711_s3 = scalar_lea.vmem %s20_s19, 4096  ;;  %p1716_p6 = scmp.lt.s32.totalorder %s20_s19, %s20_s19 }
  0x2d   :  { %p1712_p5 = scmp.ne.s32.totalorder %s20_s19, %s1711_s3  ;;  %p1717_p7 = scmp.lt.s32.totalorder %s1711_s3, %s1711_s3 }
  0x2f   :  { %p1718_p8 = por %p1717_p7, %p1716_p6 }
  0x31   :  { %p1719_p9 = pnand %p1718_p8, %p1712_p5 }
  0x33   :  { %1722 = shalt.err (!%p1719_p9)
}
  0x34   :  { %25 = dma.hbm_to_vmem [thread:$0]  %s2057_s0, 4096, %s20_s19, [#allocation4], %s1799_s30, %s1799_s30, %s1800_s6  }
  0x35   :  { %s1723_s10 = scalar_lea.hbm %s2059_s2, 16 }
  0x36   :  { %p1724_p10 = scmp.ne.s32.totalorder %s2059_s2, %s1723_s10  ;;  %p1727_p11 = scmp.lt.u32.totalorder %s1723_s10, %s2059_s2 }
  0x38   :  { %p1729_p12 = pnand %p1727_p11, %p1724_p10 }
  0x3a   :  { %1732 = shalt.err (!%p1729_p12)
}
  0x3b   :  { %s1733_s15 = scalar_lea.vmem %s45_s22, 16  ;;  %s1737_s16 = scalar_lea.vmem %s45_s22, 32 }
  0x3c   :  { %p1734_p13 = scmp.ne.s32.totalorder %s45_s22, %s1733_s15  ;;  %p1738_p0 = scmp.lt.s32.totalorder %s45_s22, %s45_s22 }
  0x3d   :  { %p1739_p1 = scmp.lt.s32.totalorder %s1737_s16, %s1733_s15 }
  0x3f   :  { %p1740_p2 = por %p1739_p1, %p1738_p0 }
  0x41   :  { %p1741_p3 = pnand %p1740_p2, %p1734_p13 }
  0x43   :  { %1744 = shalt.err (!%p1741_p3)
}
  0x44   :  { %47 = dma.hbm_to_vmem [thread:$0]  %s2059_s2, 16, %s45_s22, [#allocation7]  }
  0x45   :  { %s1803_s6 = smov [#allocation11]   ;;  %s1745_s19 = scalar_lea.hbm %s2061_s4, 16 }
  0x46   :  { %s66_s1 = sshll.u32 %s1803_s6, 4  ;;  %p1746_p4 = scmp.ne.s32.totalorder %s2061_s4, %s1745_s19  ;;  %s67_s1 = int_to_ptr.vmem [resolvable:$true] %s66_s1 }
  0x47   :  { %p1749_p5 = scmp.lt.u32.totalorder %s1745_s19, %s2061_s4 }
  0x49   :  { %p1751_p6 = pnand %p1749_p5, %p1746_p4 }
  0x4b   :  { %1754 = shalt.err (!%p1751_p6)
}
  0x4c   :  { %s1755_s26 = scalar_lea.vmem %s67_s1, 16  ;;  %s1759_s2 = scalar_lea.vmem %s67_s1, 32 }
  0x4d   :  { %p1756_p7 = scmp.ne.s32.totalorder %s67_s1, %s1755_s26  ;;  %p1760_p8 = scmp.lt.s32.totalorder %s67_s1, %s67_s1 }
  0x4e   :  { %p1761_p9 = scmp.lt.s32.totalorder %s1759_s2, %s1755_s26 }
  0x50   :  { %p1762_p10 = por %p1761_p9, %p1760_p8 }
  0x52   :  { %p1763_p11 = pnand %p1762_p10, %p1756_p7 }
  0x54   :  { %1766 = shalt.err (!%p1763_p11)
}
  0x55   :  { %69 = dma.hbm_to_vmem [thread:$0]  %s2061_s4, 16, %s67_s1, [#allocation10]  }
  0x56   :  { %1789 = dma.done.wait [#allocation4], 4096  }
  0x57   :  { %1790 = vsyncadd [#allocation4], 4294963200 }
  0x58   :  { %1791 = dma.done.wait [#allocation7], 1040  }
  0x59   :  { %1792 = vsyncadd [#allocation7], 4294966256 }
  0x5a   :  { %1793 = dma.done.wait [#allocation10], 1040  }
  0x5b   :  { %1794 = vsyncadd [#allocation10], 4294966256  ;;  %v1609_v0 = vld [vmem:[#allocation6] sm:$0xff]   ;;  %v1610_v1 = vld [vmem:[#allocation6 + $0x8] sm:$0xff]   ;;  %s1804_s4 = smov [#allocation12]  }
  0x5c   :  { %1439 = vmatprep.subr.bf16.mxu0 %v1609_v0  ;;  %v1611_v2 = vld [vmem:[#allocation6 + $0x10] sm:$0xff]   ;;  %v1612_v3 = vld [vmem:[#allocation6 + $0x18] sm:$0xff]   ;;  %v1617_v4 = vld [vmem:[#allocation3] sm:$0xff]   ;;  %s1295_s28 = sshll.u32 %s1804_s4, 4  ;;  %s1296_s28 = int_to_ptr.vmem [resolvable:$true] %s1295_s28 }
  0x5d   :  { %1440 = vmatpush3.bf16.msra.mxu0 %v1609_v0  ;;  %1455 = vmatprep.mubr.bf16.mxu0 %v1617_v4  ;;  %v1613_v5 = vld [vmem:[#allocation6 + $0x20] sm:$0xff]   ;;  %v1614_v6 = vld [vmem:[#allocation6 + $0x28] sm:$0xff]   ;;  %v1615_v7 = vld [vmem:[#allocation6 + $0x30] sm:$0xff]   ;;  %s1767_s29 = scalar_lea.vmem %s1296_s28, 8192  ;;  %p1772_p13 = scmp.lt.s32.totalorder %s1296_s28, %s1296_s28 }
  0x5e   :  { %1441 = vmatprep.subr.bf16.mxu0 %v1610_v1  ;;  %v1616_v8 = vld [vmem:[#allocation6 + $0x38] sm:$0xff]   ;;  %v1618_v9 = vld [vmem:[#allocation3 + $0x8] sm:$0xff]   ;;  %v1619_v10 = vld [vmem:[#allocation3 + $0x10] sm:$0xff]   ;;  %p1768_p12 = scmp.ne.s32.totalorder %s1296_s28, %s1767_s29  ;;  %p1773_p0 = scmp.lt.s32.totalorder %s1767_s29, %s1767_s29 }
  0x5f   :  { %v1620_v11 = vld [vmem:[#allocation3 + $0x18] sm:$0xff]   ;;  %v1621_v12 = vld [vmem:[#allocation3 + $0x20] sm:$0xff]   ;;  %v1650_v14 = vld [vmem:[#allocation9 + $0x8] sm:$0xff]  }
  0x60   :  { %v1649_v13 = vld [vmem:[#allocation9] sm:$0xff]   ;;  %v1651_v15 = vld [vmem:[#allocation9 + $0x10] sm:$0xff]   ;;  %v1652_v18 = vld [vmem:[#allocation9 + $0x18] sm:$0xff]   ;;  %p1774_p1 = por %p1773_p0, %p1772_p13 }
  0x61   :  { %1442 = vmatpush3.bf16.msra.mxu0 %v1610_v1  ;;  %1519 = vmatprep.subr.bf16.mxu1 %v1649_v13  ;;  %v1622_v16 = vld [vmem:[#allocation3 + $0x28] sm:$0xff]   ;;  %v1623_v17 = vld [vmem:[#allocation3 + $0x30] sm:$0xff]   ;;  %v1624_v20 = vld [vmem:[#allocation3 + $0x38] sm:$0xff]  }
  0x62   :  { %1443 = vmatprep.subr.bf16.mxu0 %v1611_v2  ;;  %1520 = vmatpush3.bf16.msra.mxu1 %v1649_v13  ;;  %v1653_v19 = vld [vmem:[#allocation9 + $0x20] sm:$0xff]   ;;  %v1654_v22 = vld [vmem:[#allocation9 + $0x28] sm:$0xff]   ;;  %v1628_v25 = vld [vmem:[#allocation3 + $0x58] sm:$0xff]   ;;  %p1775_p2 = pnand %p1774_p1, %p1768_p12 }
  0x63   :  { %1521 = vmatprep.subr.bf16.mxu1 %v1650_v14  ;;  %v1625_v21 = vld [vmem:[#allocation3 + $0x40] sm:$0xff]   ;;  %v1626_v23 = vld [vmem:[#allocation3 + $0x48] sm:$0xff]   ;;  %v1627_v24 = vld [vmem:[#allocation3 + $0x50] sm:$0xff]  }
  0x64   :  { %v1629_v26 = vld [vmem:[#allocation3 + $0x60] sm:$0xff]   ;;  %v1630_v27 = vld [vmem:[#allocation3 + $0x68] sm:$0xff]   ;;  %v1631_v28 = vld [vmem:[#allocation3 + $0x70] sm:$0xff]  }
  0x65   :  { %1444 = vmatpush3.bf16.msra.mxu0 %v1611_v2  ;;  %v1632_v29 = vld [vmem:[#allocation3 + $0x78] sm:$0xff]   ;;  %v1633_v30 = vld [vmem:[#allocation3 + $0x80] sm:$0xff]   ;;  %v1634_v31 = vld [vmem:[#allocation3 + $0x88] sm:$0xff]  }
  0x66   :  { %1445 = vmatprep.subr.bf16.mxu0 %v1612_v3  ;;  %1522 = vmatpush3.bf16.msra.mxu1 %v1650_v14  ;;  %v1635_v32 = vld [vmem:[#allocation3 + $0x90] sm:$0xff]   ;;  %v1636_v33 = vld [vmem:[#allocation3 + $0x98] sm:$0xff]   ;;  %v1637_v34 = vld [vmem:[#allocation3 + $0xa0] sm:$0xff]  }
  0x67   :  { %1523 = vmatprep.subr.bf16.mxu1 %v1651_v15  ;;  %v1638_v35 = vld [vmem:[#allocation3 + $0xa8] sm:$0xff]   ;;  %v1639_v36 = vld [vmem:[#allocation3 + $0xb0] sm:$0xff]   ;;  %v1640_v37 = vld [vmem:[#allocation3 + $0xb8] sm:$0xff]  }
  0x68   :  { %v1655_v38 = vld [vmem:[#allocation9 + $0x30] sm:$0xff]   ;;  %v1641_v39 = vld [vmem:[#allocation3 + $0xc0] sm:$0xff]   ;;  %v1642_v41 = vld [vmem:[#allocation3 + $0xc8] sm:$0xff]  }
  0x69   :  { %1446 = vmatpush3.bf16.msra.mxu0 %v1612_v3  ;;  %v1656_v40 = vld [vmem:[#allocation9 + $0x38] sm:$0xff]   ;;  %v1643_v42 = vld [vmem:[#allocation3 + $0xd0] sm:$0xff]   ;;  %v1646_v45 = vld [vmem:[#allocation3 + $0xe8] sm:$0xff]  }
  0x6a   :  { %1447 = vmatprep.subr.bf16.mxu0 %v1613_v5  ;;  %1524 = vmatpush3.bf16.msra.mxu1 %v1651_v15  ;;  %v1644_v43 = vld [vmem:[#allocation3 + $0xd8] sm:$0xff]   ;;  %v1645_v44 = vld [vmem:[#allocation3 + $0xe0] sm:$0xff]   ;;  %v1647_v46 = vld [vmem:[#allocation3 + $0xf0] sm:$0xff]  }
  0x6b   :  { %1525 = vmatprep.subr.bf16.mxu1 %v1652_v18  ;;  %v1648_v47 = vld [vmem:[#allocation3 + $0xf8] sm:$0xff]   ;;  %v1913_v48 = vld [vmem:[#allocation8] ss:$0 sm:$0xff] }
  0x6d   :  { %1448 = vmatpush3.bf16.msra.mxu0 %v1613_v5 }
  0x6e   :  { %1449 = vmatprep.subr.bf16.mxu0 %v1614_v6  ;;  %1526 = vmatpush3.bf16.msra.mxu1 %v1652_v18 }
  0x6f   :  { %1527 = vmatprep.subr.bf16.mxu1 %v1653_v19 }
  0x71   :  { %1450 = vmatpush3.bf16.msra.mxu0 %v1614_v6 }
  0x72   :  { %1451 = vmatprep.subr.bf16.mxu0 %v1615_v7  ;;  %1528 = vmatpush3.bf16.msra.mxu1 %v1653_v19 }
  0x73   :  { %1529 = vmatprep.subr.bf16.mxu1 %v1654_v22 }
  0x75   :  { %1452 = vmatpush3.bf16.msra.mxu0 %v1615_v7 }
  0x76   :  { %1453 = vmatprep.subr.bf16.mxu0 %v1616_v8  ;;  %1530 = vmatpush3.bf16.msra.mxu1 %v1654_v22 }
  0x77   :  { %1531 = vmatprep.subr.bf16.mxu1 %v1655_v38 }
  0x79   :  { %1454 = vmatpush3.bf16.msra.mxu0 %v1616_v8 }
  0x7a   :  { %1532 = vmatpush3.bf16.msra.mxu1 %v1655_v38 }
  0x7b   :  { %1533 = vmatprep.subr.bf16.mxu1 %v1656_v40 }
  0x7c   :  { %1456 = vmatmul.mubr.bf16.vlgmr.msra.gmra.mrb[0].mxu0 %v1618_v9 }
  0x7d   :  { %1459 = vmatprep.mubr.bf16.mxu0 %v1619_v10 }
  0x7e   :  { %1534 = vmatpush3.bf16.msra.mxu1 %v1656_v40 }
  0x84   :  { %1460 = vmatmul.mubr.bf16.gmra.mrb[4].mxu0 %v1620_v11 }
  0x85   :  { %1463 = vmatprep.mubr.bf16.mxu0 %v1621_v12 }
  0x8c   :  { %1464 = vmatmul.mubr.bf16.gmra.mrb[8].mxu0 %v1622_v16 }
  0x8d   :  { %1467 = vmatprep.mubr.bf16.mxu0 %v1623_v17 }
  0x94   :  { %1468 = vmatmul.mubr.bf16.gmra.mrb[12].mxu0 %v1624_v20 }
  0x95   :  { %1471 = vmatprep.mubr.bf16.mxu0 %v1625_v21 }
  0x9c   :  { %1472 = vmatmul.mubr.bf16.gmra.mrb[16].mxu0 %v1626_v23 }
  0x9d   :  { %1475 = vmatprep.mubr.bf16.mxu0 %v1627_v24 }
  0xa4   :  { %1476 = vmatmul.mubr.bf16.gmra.mrb[20].mxu0 %v1628_v25 }
  0xa5   :  { %1479 = vmatprep.mubr.bf16.mxu0 %v1629_v26 }
  0xac   :  { %1480 = vmatmul.mubr.bf16.gmra.mrb[24].mxu0 %v1630_v27 }
  0xad   :  { %1483 = vmatprep.mubr.bf16.mxu0 %v1631_v28 }
  0xb4   :  { %1484 = vmatmul.mubr.bf16.gmra.mrb[28].mxu0 %v1632_v29 }
  0xb5   :  { %1487 = vmatprep.mubr.bf16.mxu0 %v1633_v30 }
  0xbc   :  { %1488 = vmatmul.mubr.bf16.gmra.mrb[32].mxu0 %v1634_v31 }
  0xbd   :  { %1491 = vmatprep.mubr.bf16.mxu0 %v1635_v32 }
  0xc4   :  { %1492 = vmatmul.mubr.bf16.gmra.mrb[36].mxu0 %v1636_v33 }
  0xc5   :  { %1495 = vmatprep.mubr.bf16.mxu0 %v1637_v34 }
  0xcc   :  { %1496 = vmatmul.mubr.bf16.gmra.mrb[40].mxu0 %v1638_v35 }
  0xcd   :  { %1499 = vmatprep.mubr.bf16.mxu0 %v1639_v36 }
  0xd4   :  { %1500 = vmatmul.mubr.bf16.gmra.mrb[44].mxu0 %v1640_v37 }
  0xd5   :  { %1503 = vmatprep.mubr.bf16.mxu0 %v1641_v39 }
  0xdc   :  { %1504 = vmatmul.mubr.bf16.gmra.mrb[48].mxu0 %v1642_v41 }
  0xdd   :  { %1507 = vmatprep.mubr.bf16.mxu0 %v1643_v42 }
  0xe4   :  { %1508 = vmatmul.mubr.bf16.gmra.mrb[52].mxu0 %v1644_v43 }
  0xe5   :  { %1511 = vmatprep.mubr.bf16.mxu0 %v1645_v44 }
  0xec   :  { %1512 = vmatmul.mubr.bf16.gmra.mrb[56].mxu0 %v1646_v45 }
  0xed   :  { %1515 = vmatprep.mubr.bf16.mxu0 %v1647_v46 }
  0xf4   :  { %1516 = vmatmul.mubr.bf16.gmra.mrb[60].mxu0 %v1648_v47 }
 0x14f   :  { %v1457_v49 = vpop.f32.mrb[0].mxu0 }
 0x150   :  { %v460_v50 = vadd.f32 %v1457_v49, %v1913_v48  ;;  %v451_v51 = vpop.f32.mrb[1].mxu0 }
 0x151   :  { %v452_v52 = vadd.f32 %v1913_v48, %v451_v51  ;;  %v1458_v53 = vpop.f32.mrb[2].mxu0 }
 0x152   :  { %v463_v54 = vadd.f32 %v1458_v53, %v1913_v48  ;;  %v454_v55 = vpop.f32.mrb[3].mxu0  ;;  %v708_v57 = vmax.f32 %v460_v50, 0.0 }
 0x153   :  { %v455_v56 = vadd.f32 %v1913_v48, %v454_v55  ;;  %v706_v59 = vmax.f32 %v452_v52, 0.0 }
 0x154   :  { %v709_v58 = vmax.f32 %v463_v54, 0.0 }
 0x155   :  { %v707_v60 = vmax.f32 %v455_v56, 0.0 }
 0x156   :  { %v771_v61 = vpack.c.bf16 %v709_v58, %v708_v57 }
 0x157   :  { %v1461_v62 = vpop.f32.mrb[4].mxu0  ;;  %v770_v63 = vpack.c.bf16 %v707_v60, %v706_v59 }
 0x158   :  { %v476_v0 = vadd.f32 %v1461_v62, %v1913_v48  ;;  %v467_v1 = vpop.f32.mrb[5].mxu0 }
 0x159   :  { %v468_v2 = vadd.f32 %v1913_v48, %v467_v1  ;;  %v1462_v3 = vpop.f32.mrb[6].mxu0  ;;  %1535 = vmatprep.mubr.bf16.mxu1 %v770_v63 }
 0x15a   :  { %v479_v4 = vadd.f32 %v1462_v3, %v1913_v48  ;;  %v470_v5 = vpop.f32.mrb[7].mxu0  ;;  %1536 = vmatmul.mubr.bf16.vlgmr.msra.gmra.mrb[0].mxu1 %v771_v61  ;;  %v712_v7 = vmax.f32 %v476_v0, 0.0 }
 0x15b   :  { %v471_v6 = vadd.f32 %v1913_v48, %v470_v5  ;;  %v710_v9 = vmax.f32 %v468_v2, 0.0 }
 0x15c   :  { %v713_v8 = vmax.f32 %v479_v4, 0.0 }
 0x15d   :  { %v711_v10 = vmax.f32 %v471_v6, 0.0 }
 0x15e   :  { %v773_v11 = vpack.c.bf16 %v713_v8, %v712_v7 }
 0x15f   :  { %v772_v12 = vpack.c.bf16 %v711_v10, %v710_v9  ;;  %v1465_v13 = vpop.f32.mrb[8].mxu0 }
 0x160   :  { %v492_v14 = vadd.f32 %v1465_v13, %v1913_v48  ;;  %v483_v15 = vpop.f32.mrb[9].mxu0 }
 0x161   :  { %v484_v16 = vadd.f32 %v1913_v48, %v483_v15  ;;  %v1466_v17 = vpop.f32.mrb[10].mxu0  ;;  %1539 = vmatprep.mubr.bf16.mxu1 %v772_v12 }
 0x162   :  { %v495_v18 = vadd.f32 %v1466_v17, %v1913_v48  ;;  %v486_v19 = vpop.f32.mrb[11].mxu0  ;;  %1540 = vmatmul.mubr.bf16.gmra.mrb[4].mxu1 %v773_v11  ;;  %v716_v21 = vmax.f32 %v492_v14, 0.0 }
 0x163   :  { %v487_v20 = vadd.f32 %v1913_v48, %v486_v19  ;;  %v714_v23 = vmax.f32 %v484_v16, 0.0 }
 0x164   :  { %v717_v22 = vmax.f32 %v495_v18, 0.0 }
 0x165   :  { %v715_v24 = vmax.f32 %v487_v20, 0.0 }
 0x166   :  { %v775_v25 = vpack.c.bf16 %v717_v22, %v716_v21 }
 0x167   :  { %v774_v26 = vpack.c.bf16 %v715_v24, %v714_v23  ;;  %v1469_v27 = vpop.f32.mrb[12].mxu0 }
 0x168   :  { %v508_v28 = vadd.f32 %v1469_v27, %v1913_v48  ;;  %v499_v29 = vpop.f32.mrb[13].mxu0 }
 0x169   :  { %v500_v30 = vadd.f32 %v1913_v48, %v499_v29  ;;  %v1470_v31 = vpop.f32.mrb[14].mxu0  ;;  %1543 = vmatprep.mubr.bf16.mxu1 %v774_v26 }
 0x16a   :  { %v511_v32 = vadd.f32 %v1470_v31, %v1913_v48  ;;  %v502_v33 = vpop.f32.mrb[15].mxu0  ;;  %1544 = vmatmul.mubr.bf16.gmra.mrb[8].mxu1 %v775_v25  ;;  %v720_v35 = vmax.f32 %v508_v28, 0.0 }
 0x16b   :  { %v503_v34 = vadd.f32 %v1913_v48, %v502_v33  ;;  %v718_v37 = vmax.f32 %v500_v30, 0.0 }
 0x16c   :  { %v721_v36 = vmax.f32 %v511_v32, 0.0 }
 0x16d   :  { %v719_v38 = vmax.f32 %v503_v34, 0.0 }
 0x16e   :  { %v777_v39 = vpack.c.bf16 %v721_v36, %v720_v35 }
 0x16f   :  { %v776_v40 = vpack.c.bf16 %v719_v38, %v718_v37  ;;  %v1473_v41 = vpop.f32.mrb[16].mxu0 }
 0x170   :  { %v524_v42 = vadd.f32 %v1473_v41, %v1913_v48  ;;  %v515_v43 = vpop.f32.mrb[17].mxu0 }
 0x171   :  { %v516_v44 = vadd.f32 %v1913_v48, %v515_v43  ;;  %v1474_v45 = vpop.f32.mrb[18].mxu0  ;;  %1547 = vmatprep.mubr.bf16.mxu1 %v776_v40 }
 0x172   :  { %v527_v46 = vadd.f32 %v1474_v45, %v1913_v48  ;;  %v518_v47 = vpop.f32.mrb[19].mxu0  ;;  %1548 = vmatmul.mubr.bf16.gmra.mrb[12].mxu1 %v777_v39  ;;  %v724_v50 = vmax.f32 %v524_v42, 0.0 }
 0x173   :  { %v519_v49 = vadd.f32 %v1913_v48, %v518_v47  ;;  %v722_v52 = vmax.f32 %v516_v44, 0.0 }
 0x174   :  { %v725_v51 = vmax.f32 %v527_v46, 0.0 }
 0x175   :  { %v723_v53 = vmax.f32 %v519_v49, 0.0 }
 0x176   :  { %v779_v54 = vpack.c.bf16 %v725_v51, %v724_v50 }
 0x177   :  { %v778_v55 = vpack.c.bf16 %v723_v53, %v722_v52  ;;  %v1477_v56 = vpop.f32.mrb[20].mxu0 }
 0x178   :  { %v540_v57 = vadd.f32 %v1477_v56, %v1913_v48  ;;  %v531_v58 = vpop.f32.mrb[21].mxu0 }
 0x179   :  { %v532_v59 = vadd.f32 %v1913_v48, %v531_v58  ;;  %v1478_v60 = vpop.f32.mrb[22].mxu0  ;;  %1551 = vmatprep.mubr.bf16.mxu1 %v778_v55 }
 0x17a   :  { %v543_v61 = vadd.f32 %v1478_v60, %v1913_v48  ;;  %v534_v62 = vpop.f32.mrb[23].mxu0  ;;  %1552 = vmatmul.mubr.bf16.gmra.mrb[16].mxu1 %v779_v54  ;;  %v728_v0 = vmax.f32 %v540_v57, 0.0 }
 0x17b   :  { %v535_v63 = vadd.f32 %v1913_v48, %v534_v62  ;;  %v726_v2 = vmax.f32 %v532_v59, 0.0 }
 0x17c   :  { %v729_v1 = vmax.f32 %v543_v61, 0.0 }
 0x17d   :  { %v727_v3 = vmax.f32 %v535_v63, 0.0 }
 0x17e   :  { %v781_v4 = vpack.c.bf16 %v729_v1, %v728_v0 }
 0x17f   :  { %v780_v5 = vpack.c.bf16 %v727_v3, %v726_v2  ;;  %v1481_v6 = vpop.f32.mrb[24].mxu0 }
 0x180   :  { %v556_v7 = vadd.f32 %v1481_v6, %v1913_v48  ;;  %v547_v8 = vpop.f32.mrb[25].mxu0 }
 0x181   :  { %v548_v9 = vadd.f32 %v1913_v48, %v547_v8  ;;  %v1482_v10 = vpop.f32.mrb[26].mxu0  ;;  %1555 = vmatprep.mubr.bf16.mxu1 %v780_v5 }
 0x182   :  { %v559_v11 = vadd.f32 %v1482_v10, %v1913_v48  ;;  %v550_v12 = vpop.f32.mrb[27].mxu0  ;;  %1556 = vmatmul.mubr.bf16.gmra.mrb[20].mxu1 %v781_v4  ;;  %v732_v14 = vmax.f32 %v556_v7, 0.0 }
 0x183   :  { %v551_v13 = vadd.f32 %v1913_v48, %v550_v12  ;;  %v730_v16 = vmax.f32 %v548_v9, 0.0 }
 0x184   :  { %v733_v15 = vmax.f32 %v559_v11, 0.0 }
 0x185   :  { %v731_v17 = vmax.f32 %v551_v13, 0.0 }
 0x186   :  { %v783_v18 = vpack.c.bf16 %v733_v15, %v732_v14 }
 0x187   :  { %v782_v19 = vpack.c.bf16 %v731_v17, %v730_v16  ;;  %v1485_v20 = vpop.f32.mrb[28].mxu0 }
 0x188   :  { %v572_v21 = vadd.f32 %v1485_v20, %v1913_v48  ;;  %v563_v22 = vpop.f32.mrb[29].mxu0 }
 0x189   :  { %v564_v23 = vadd.f32 %v1913_v48, %v563_v22  ;;  %v1486_v24 = vpop.f32.mrb[30].mxu0  ;;  %1559 = vmatprep.mubr.bf16.mxu1 %v782_v19 }
 0x18a   :  { %v575_v25 = vadd.f32 %v1486_v24, %v1913_v48  ;;  %v566_v26 = vpop.f32.mrb[31].mxu0  ;;  %1560 = vmatmul.mubr.bf16.gmra.mrb[24].mxu1 %v783_v18  ;;  %v736_v28 = vmax.f32 %v572_v21, 0.0 }
 0x18b   :  { %v567_v27 = vadd.f32 %v1913_v48, %v566_v26  ;;  %v734_v30 = vmax.f32 %v564_v23, 0.0 }
 0x18c   :  { %v737_v29 = vmax.f32 %v575_v25, 0.0 }
 0x18d   :  { %v735_v31 = vmax.f32 %v567_v27, 0.0 }
 0x18e   :  { %v785_v32 = vpack.c.bf16 %v737_v29, %v736_v28 }
 0x18f   :  { %v784_v33 = vpack.c.bf16 %v735_v31, %v734_v30  ;;  %v1489_v34 = vpop.f32.mrb[32].mxu0 }
 0x190   :  { %v588_v35 = vadd.f32 %v1489_v34, %v1913_v48  ;;  %v579_v36 = vpop.f32.mrb[33].mxu0 }
 0x191   :  { %v580_v37 = vadd.f32 %v1913_v48, %v579_v36  ;;  %v1490_v38 = vpop.f32.mrb[34].mxu0  ;;  %1563 = vmatprep.mubr.bf16.mxu1 %v784_v33 }
 0x192   :  { %v591_v39 = vadd.f32 %v1490_v38, %v1913_v48  ;;  %v582_v40 = vpop.f32.mrb[35].mxu0  ;;  %1564 = vmatmul.mubr.bf16.gmra.mrb[28].mxu1 %v785_v32  ;;  %v740_v42 = vmax.f32 %v588_v35, 0.0 }
 0x193   :  { %v583_v41 = vadd.f32 %v1913_v48, %v582_v40  ;;  %v738_v44 = vmax.f32 %v580_v37, 0.0 }
 0x194   :  { %v741_v43 = vmax.f32 %v591_v39, 0.0 }
 0x195   :  { %v739_v45 = vmax.f32 %v583_v41, 0.0 }
 0x196   :  { %v787_v46 = vpack.c.bf16 %v741_v43, %v740_v42 }
 0x197   :  { %v786_v47 = vpack.c.bf16 %v739_v45, %v738_v44  ;;  %v1493_v49 = vpop.f32.mrb[36].mxu0 }
 0x198   :  { %v604_v50 = vadd.f32 %v1493_v49, %v1913_v48  ;;  %v595_v51 = vpop.f32.mrb[37].mxu0 }
 0x199   :  { %v596_v52 = vadd.f32 %v1913_v48, %v595_v51  ;;  %v1494_v53 = vpop.f32.mrb[38].mxu0  ;;  %1567 = vmatprep.mubr.bf16.mxu1 %v786_v47 }
 0x19a   :  { %v607_v54 = vadd.f32 %v1494_v53, %v1913_v48  ;;  %v598_v55 = vpop.f32.mrb[39].mxu0  ;;  %1568 = vmatmul.mubr.bf16.gmra.mrb[32].mxu1 %v787_v46  ;;  %v744_v57 = vmax.f32 %v604_v50, 0.0 }
 0x19b   :  { %v599_v56 = vadd.f32 %v1913_v48, %v598_v55  ;;  %v742_v59 = vmax.f32 %v596_v52, 0.0 }
 0x19c   :  { %v745_v58 = vmax.f32 %v607_v54, 0.0 }
 0x19d   :  { %v743_v60 = vmax.f32 %v599_v56, 0.0 }
 0x19e   :  { %v789_v61 = vpack.c.bf16 %v745_v58, %v744_v57 }
 0x19f   :  { %v788_v62 = vpack.c.bf16 %v743_v60, %v742_v59  ;;  %v1497_v63 = vpop.f32.mrb[40].mxu0 }
 0x1a0   :  { %v620_v0 = vadd.f32 %v1497_v63, %v1913_v48  ;;  %v611_v1 = vpop.f32.mrb[41].mxu0 }
 0x1a1   :  { %v612_v2 = vadd.f32 %v1913_v48, %v611_v1  ;;  %v1498_v3 = vpop.f32.mrb[42].mxu0  ;;  %1571 = vmatprep.mubr.bf16.mxu1 %v788_v62 }
 0x1a2   :  { %v623_v4 = vadd.f32 %v1498_v3, %v1913_v48  ;;  %v614_v5 = vpop.f32.mrb[43].mxu0  ;;  %1572 = vmatmul.mubr.bf16.gmra.mrb[36].mxu1 %v789_v61  ;;  %v748_v7 = vmax.f32 %v620_v0, 0.0 }
 0x1a3   :  { %v615_v6 = vadd.f32 %v1913_v48, %v614_v5  ;;  %v746_v9 = vmax.f32 %v612_v2, 0.0 }
 0x1a4   :  { %v749_v8 = vmax.f32 %v623_v4, 0.0 }
 0x1a5   :  { %v747_v10 = vmax.f32 %v615_v6, 0.0 }
 0x1a6   :  { %v791_v11 = vpack.c.bf16 %v749_v8, %v748_v7 }
 0x1a7   :  { %v790_v12 = vpack.c.bf16 %v747_v10, %v746_v9  ;;  %v1501_v13 = vpop.f32.mrb[44].mxu0 }
 0x1a8   :  { %v636_v14 = vadd.f32 %v1501_v13, %v1913_v48  ;;  %v627_v15 = vpop.f32.mrb[45].mxu0 }
 0x1a9   :  { %v628_v16 = vadd.f32 %v1913_v48, %v627_v15  ;;  %v1502_v17 = vpop.f32.mrb[46].mxu0  ;;  %1575 = vmatprep.mubr.bf16.mxu1 %v790_v12 }
 0x1aa   :  { %v639_v18 = vadd.f32 %v1502_v17, %v1913_v48  ;;  %v630_v19 = vpop.f32.mrb[47].mxu0  ;;  %1576 = vmatmul.mubr.bf16.gmra.mrb[40].mxu1 %v791_v11  ;;  %v752_v21 = vmax.f32 %v636_v14, 0.0 }
 0x1ab   :  { %v631_v20 = vadd.f32 %v1913_v48, %v630_v19  ;;  %v750_v23 = vmax.f32 %v628_v16, 0.0 }
 0x1ac   :  { %v753_v22 = vmax.f32 %v639_v18, 0.0 }
 0x1ad   :  { %v751_v24 = vmax.f32 %v631_v20, 0.0  ;;  %v1979_v20 = vld [vmem:[#allocation11] ss:$0 sm:$0xff] }
 0x1ae   :  { %v793_v25 = vpack.c.bf16 %v753_v22, %v752_v21 }
 0x1af   :  { %v792_v26 = vpack.c.bf16 %v751_v24, %v750_v23  ;;  %v1505_v27 = vpop.f32.mrb[48].mxu0 }
 0x1b0   :  { %v652_v28 = vadd.f32 %v1505_v27, %v1913_v48  ;;  %v643_v29 = vpop.f32.mrb[49].mxu0 }
 0x1b1   :  { %v644_v30 = vadd.f32 %v1913_v48, %v643_v29  ;;  %v1506_v31 = vpop.f32.mrb[50].mxu0  ;;  %1579 = vmatprep.mubr.bf16.mxu1 %v792_v26 }
 0x1b2   :  { %v655_v32 = vadd.f32 %v1506_v31, %v1913_v48  ;;  %v646_v33 = vpop.f32.mrb[51].mxu0  ;;  %1580 = vmatmul.mubr.bf16.gmra.mrb[44].mxu1 %v793_v25  ;;  %v756_v35 = vmax.f32 %v652_v28, 0.0 }
 0x1b3   :  { %v647_v34 = vadd.f32 %v1913_v48, %v646_v33  ;;  %v754_v37 = vmax.f32 %v644_v30, 0.0 }
 0x1b4   :  { %v757_v36 = vmax.f32 %v655_v32, 0.0 }
 0x1b5   :  { %v755_v38 = vmax.f32 %v647_v34, 0.0 }
 0x1b6   :  { %v795_v39 = vpack.c.bf16 %v757_v36, %v756_v35 }
 0x1b7   :  { %v794_v40 = vpack.c.bf16 %v755_v38, %v754_v37  ;;  %v1509_v41 = vpop.f32.mrb[52].mxu0 }
 0x1b8   :  { %v668_v42 = vadd.f32 %v1509_v41, %v1913_v48  ;;  %v659_v43 = vpop.f32.mrb[53].mxu0 }
 0x1b9   :  { %v660_v44 = vadd.f32 %v1913_v48, %v659_v43  ;;  %v1510_v45 = vpop.f32.mrb[54].mxu0  ;;  %1583 = vmatprep.mubr.bf16.mxu1 %v794_v40 }
 0x1ba   :  { %v671_v46 = vadd.f32 %v1510_v45, %v1913_v48  ;;  %v662_v47 = vpop.f32.mrb[55].mxu0  ;;  %1584 = vmatmul.mubr.bf16.gmra.mrb[48].mxu1 %v795_v39  ;;  %v760_v50 = vmax.f32 %v668_v42, 0.0 }
 0x1bb   :  { %v663_v49 = vadd.f32 %v1913_v48, %v662_v47  ;;  %v758_v52 = vmax.f32 %v660_v44, 0.0 }
 0x1bc   :  { %v761_v51 = vmax.f32 %v671_v46, 0.0 }
 0x1bd   :  { %v759_v53 = vmax.f32 %v663_v49, 0.0 }
 0x1be   :  { %v797_v54 = vpack.c.bf16 %v761_v51, %v760_v50 }
 0x1bf   :  { %v796_v55 = vpack.c.bf16 %v759_v53, %v758_v52  ;;  %v1513_v56 = vpop.f32.mrb[56].mxu0 }
 0x1c0   :  { %v684_v57 = vadd.f32 %v1513_v56, %v1913_v48  ;;  %v675_v58 = vpop.f32.mrb[57].mxu0 }
 0x1c1   :  { %v676_v59 = vadd.f32 %v1913_v48, %v675_v58  ;;  %v1514_v60 = vpop.f32.mrb[58].mxu0  ;;  %1587 = vmatprep.mubr.bf16.mxu1 %v796_v55 }
 0x1c2   :  { %v687_v61 = vadd.f32 %v1514_v60, %v1913_v48  ;;  %v678_v62 = vpop.f32.mrb[59].mxu0  ;;  %1588 = vmatmul.mubr.bf16.gmra.mrb[52].mxu1 %v797_v54  ;;  %v764_v0 = vmax.f32 %v684_v57, 0.0 }
 0x1c3   :  { %v679_v63 = vadd.f32 %v1913_v48, %v678_v62  ;;  %v762_v2 = vmax.f32 %v676_v59, 0.0 }
 0x1c4   :  { %v765_v1 = vmax.f32 %v687_v61, 0.0 }
 0x1c5   :  { %v763_v3 = vmax.f32 %v679_v63, 0.0 }
 0x1c6   :  { %v799_v4 = vpack.c.bf16 %v765_v1, %v764_v0 }
 0x1c7   :  { %v798_v5 = vpack.c.bf16 %v763_v3, %v762_v2  ;;  %v1517_v6 = vpop.f32.mrb[60].mxu0 }
 0x1c8   :  { %v700_v7 = vadd.f32 %v1517_v6, %v1913_v48  ;;  %v691_v8 = vpop.f32.mrb[61].mxu0 }
 0x1c9   :  { %v692_v9 = vadd.f32 %v1913_v48, %v691_v8  ;;  %v1518_v10 = vpop.f32.mrb[62].mxu0  ;;  %1591 = vmatprep.mubr.bf16.mxu1 %v798_v5 }
 0x1ca   :  { %v703_v11 = vadd.f32 %v1518_v10, %v1913_v48  ;;  %v694_v12 = vpop.f32.mrb[63].mxu0  ;;  %1592 = vmatmul.mubr.bf16.gmra.mrb[56].mxu1 %v799_v4  ;;  %v768_v14 = vmax.f32 %v700_v7, 0.0 }
 0x1cb   :  { %v695_v13 = vadd.f32 %v1913_v48, %v694_v12  ;;  %v766_v16 = vmax.f32 %v692_v9, 0.0 }
 0x1cc   :  { %v769_v15 = vmax.f32 %v703_v11, 0.0 }
 0x1cd   :  { %v767_v17 = vmax.f32 %v695_v13, 0.0 }
 0x1ce   :  { %v801_v18 = vpack.c.bf16 %v769_v15, %v768_v14 }
 0x1cf   :  { %v800_v19 = vpack.c.bf16 %v767_v17, %v766_v16 }
 0x1d1   :  { %1595 = vmatprep.mubr.bf16.mxu1 %v800_v19 }
 0x1d2   :  { %1596 = vmatmul.mubr.bf16.gmra.mrb[60].mxu1 %v801_v18 }
 0x22d   :  { %v1537_v21 = vpop.f32.mrb[0].mxu1 }
 0x22e   :  { %v980_v22 = vadd.f32 %v1537_v21, %v1979_v20  ;;  %v971_v23 = vpop.f32.mrb[1].mxu1 }
 0x22f   :  { %v972_v24 = vadd.f32 %v1979_v20, %v971_v23  ;;  %v1538_v25 = vpop.f32.mrb[2].mxu1 }
 0x230   :  { %1228 = vst [vmem:[#allocation12 + $0x10] sm:$0xff] %v980_v22  ;;  %v983_v48 = vadd.f32 %v1538_v25, %v1979_v20  ;;  %v974_v26 = vpop.f32.mrb[3].mxu1 }
 0x231   :  { %1226 = vst [vmem:[#allocation12] sm:$0xff] %v972_v24  ;;  %v975_v27 = vadd.f32 %v1979_v20, %v974_v26 }
 0x232   :  { %1229 = vst [vmem:[#allocation12 + $0x18] sm:$0xff] %v983_v48 }
 0x233   :  { %1227 = vst [vmem:[#allocation12 + $0x8] sm:$0xff] %v975_v27 }
 0x235   :  { %v1541_v28 = vpop.f32.mrb[4].mxu1 }
 0x236   :  { %v996_v29 = vadd.f32 %v1541_v28, %v1979_v20  ;;  %v987_v30 = vpop.f32.mrb[5].mxu1 }
 0x237   :  { %v988_v31 = vadd.f32 %v1979_v20, %v987_v30  ;;  %v1542_v32 = vpop.f32.mrb[6].mxu1 }
 0x238   :  { %1232 = vst [vmem:[#allocation12 + $0x30] sm:$0xff] %v996_v29  ;;  %v999_v33 = vadd.f32 %v1542_v32, %v1979_v20  ;;  %v990_v34 = vpop.f32.mrb[7].mxu1 }
 0x239   :  { %1230 = vst [vmem:[#allocation12 + $0x20] sm:$0xff] %v988_v31  ;;  %v991_v35 = vadd.f32 %v1979_v20, %v990_v34 }
 0x23a   :  { %1233 = vst [vmem:[#allocation12 + $0x38] sm:$0xff] %v999_v33 }
 0x23b   :  { %1231 = vst [vmem:[#allocation12 + $0x28] sm:$0xff] %v991_v35 }
 0x23d   :  { %v1545_v36 = vpop.f32.mrb[8].mxu1 }
 0x23e   :  { %v1012_v37 = vadd.f32 %v1545_v36, %v1979_v20  ;;  %v1003_v38 = vpop.f32.mrb[9].mxu1 }
 0x23f   :  { %v1004_v39 = vadd.f32 %v1979_v20, %v1003_v38  ;;  %v1546_v40 = vpop.f32.mrb[10].mxu1 }
 0x240   :  { %1236 = vst [vmem:[#allocation12 + $0x50] sm:$0xff] %v1012_v37  ;;  %v1015_v41 = vadd.f32 %v1546_v40, %v1979_v20  ;;  %v1006_v42 = vpop.f32.mrb[11].mxu1 }
 0x241   :  { %1234 = vst [vmem:[#allocation12 + $0x40] sm:$0xff] %v1004_v39  ;;  %v1007_v43 = vadd.f32 %v1979_v20, %v1006_v42 }
 0x242   :  { %1237 = vst [vmem:[#allocation12 + $0x58] sm:$0xff] %v1015_v41 }
 0x243   :  { %1235 = vst [vmem:[#allocation12 + $0x48] sm:$0xff] %v1007_v43 }
 0x245   :  { %v1549_v44 = vpop.f32.mrb[12].mxu1 }
 0x246   :  { %v1028_v45 = vadd.f32 %v1549_v44, %v1979_v20  ;;  %v1019_v46 = vpop.f32.mrb[13].mxu1 }
 0x247   :  { %v1020_v47 = vadd.f32 %v1979_v20, %v1019_v46  ;;  %v1550_v49 = vpop.f32.mrb[14].mxu1 }
 0x248   :  { %1240 = vst [vmem:[#allocation12 + $0x70] sm:$0xff] %v1028_v45  ;;  %v1031_v50 = vadd.f32 %v1550_v49, %v1979_v20  ;;  %v1022_v51 = vpop.f32.mrb[15].mxu1 }
 0x249   :  { %1238 = vst [vmem:[#allocation12 + $0x60] sm:$0xff] %v1020_v47  ;;  %v1023_v52 = vadd.f32 %v1979_v20, %v1022_v51 }
 0x24a   :  { %1241 = vst [vmem:[#allocation12 + $0x78] sm:$0xff] %v1031_v50 }
 0x24b   :  { %1239 = vst [vmem:[#allocation12 + $0x68] sm:$0xff] %v1023_v52 }
 0x24d   :  { %v1553_v53 = vpop.f32.mrb[16].mxu1 }
 0x24e   :  { %v1044_v54 = vadd.f32 %v1553_v53, %v1979_v20  ;;  %v1035_v55 = vpop.f32.mrb[17].mxu1 }
 0x24f   :  { %v1036_v56 = vadd.f32 %v1979_v20, %v1035_v55  ;;  %v1554_v57 = vpop.f32.mrb[18].mxu1 }
 0x250   :  { %1244 = vst [vmem:[#allocation12 + $0x90] sm:$0xff] %v1044_v54  ;;  %v1047_v58 = vadd.f32 %v1554_v57, %v1979_v20  ;;  %v1038_v59 = vpop.f32.mrb[19].mxu1 }
 0x251   :  { %1242 = vst [vmem:[#allocation12 + $0x80] sm:$0xff] %v1036_v56  ;;  %v1039_v60 = vadd.f32 %v1979_v20, %v1038_v59 }
 0x252   :  { %1245 = vst [vmem:[#allocation12 + $0x98] sm:$0xff] %v1047_v58 }
 0x253   :  { %1243 = vst [vmem:[#allocation12 + $0x88] sm:$0xff] %v1039_v60 }
 0x255   :  { %v1557_v61 = vpop.f32.mrb[20].mxu1 }
 0x256   :  { %v1060_v62 = vadd.f32 %v1557_v61, %v1979_v20  ;;  %v1051_v63 = vpop.f32.mrb[21].mxu1 }
 0x257   :  { %v1052_v0 = vadd.f32 %v1979_v20, %v1051_v63  ;;  %v1558_v1 = vpop.f32.mrb[22].mxu1 }
 0x258   :  { %1248 = vst [vmem:[#allocation12 + $0xb0] sm:$0xff] %v1060_v62  ;;  %v1063_v2 = vadd.f32 %v1558_v1, %v1979_v20  ;;  %v1054_v3 = vpop.f32.mrb[23].mxu1 }
 0x259   :  { %1246 = vst [vmem:[#allocation12 + $0xa0] sm:$0xff] %v1052_v0  ;;  %v1055_v4 = vadd.f32 %v1979_v20, %v1054_v3 }
 0x25a   :  { %1249 = vst [vmem:[#allocation12 + $0xb8] sm:$0xff] %v1063_v2 }
 0x25b   :  { %1247 = vst [vmem:[#allocation12 + $0xa8] sm:$0xff] %v1055_v4 }
 0x25d   :  { %v1561_v5 = vpop.f32.mrb[24].mxu1 }
 0x25e   :  { %v1076_v6 = vadd.f32 %v1561_v5, %v1979_v20  ;;  %v1067_v7 = vpop.f32.mrb[25].mxu1 }
 0x25f   :  { %v1068_v8 = vadd.f32 %v1979_v20, %v1067_v7  ;;  %v1562_v9 = vpop.f32.mrb[26].mxu1 }
 0x260   :  { %1252 = vst [vmem:[#allocation12 + $0xd0] sm:$0xff] %v1076_v6  ;;  %v1079_v10 = vadd.f32 %v1562_v9, %v1979_v20  ;;  %v1070_v11 = vpop.f32.mrb[27].mxu1 }
 0x261   :  { %1250 = vst [vmem:[#allocation12 + $0xc0] sm:$0xff] %v1068_v8  ;;  %v1071_v12 = vadd.f32 %v1979_v20, %v1070_v11 }
 0x262   :  { %1253 = vst [vmem:[#allocation12 + $0xd8] sm:$0xff] %v1079_v10 }
 0x263   :  { %1251 = vst [vmem:[#allocation12 + $0xc8] sm:$0xff] %v1071_v12 }
 0x265   :  { %v1565_v13 = vpop.f32.mrb[28].mxu1 }
 0x266   :  { %v1092_v14 = vadd.f32 %v1565_v13, %v1979_v20  ;;  %v1083_v15 = vpop.f32.mrb[29].mxu1 }
 0x267   :  { %v1084_v16 = vadd.f32 %v1979_v20, %v1083_v15  ;;  %v1566_v17 = vpop.f32.mrb[30].mxu1 }
 0x268   :  { %1256 = vst [vmem:[#allocation12 + $0xf0] sm:$0xff] %v1092_v14  ;;  %v1095_v18 = vadd.f32 %v1566_v17, %v1979_v20  ;;  %v1086_v19 = vpop.f32.mrb[31].mxu1 }
 0x269   :  { %1254 = vst [vmem:[#allocation12 + $0xe0] sm:$0xff] %v1084_v16  ;;  %v1087_v21 = vadd.f32 %v1979_v20, %v1086_v19 }
 0x26a   :  { %1257 = vst [vmem:[#allocation12 + $0xf8] sm:$0xff] %v1095_v18 }
 0x26b   :  { %1255 = vst [vmem:[#allocation12 + $0xe8] sm:$0xff] %v1087_v21 }
 0x26d   :  { %v1569_v22 = vpop.f32.mrb[32].mxu1 }
 0x26e   :  { %v1108_v23 = vadd.f32 %v1569_v22, %v1979_v20  ;;  %v1099_v24 = vpop.f32.mrb[33].mxu1 }
 0x26f   :  { %v1100_v25 = vadd.f32 %v1979_v20, %v1099_v24  ;;  %v1570_v48 = vpop.f32.mrb[34].mxu1 }
 0x270   :  { %1260 = vst [vmem:[#allocation12 + $0x110] sm:$0xff] %v1108_v23  ;;  %v1111_v26 = vadd.f32 %v1570_v48, %v1979_v20  ;;  %v1102_v27 = vpop.f32.mrb[35].mxu1 }
 0x271   :  { %1258 = vst [vmem:[#allocation12 + $0x100] sm:$0xff] %v1100_v25  ;;  %v1103_v28 = vadd.f32 %v1979_v20, %v1102_v27 }
 0x272   :  { %1261 = vst [vmem:[#allocation12 + $0x118] sm:$0xff] %v1111_v26 }
 0x273   :  { %1259 = vst [vmem:[#allocation12 + $0x108] sm:$0xff] %v1103_v28 }
 0x275   :  { %v1573_v29 = vpop.f32.mrb[36].mxu1 }
 0x276   :  { %v1124_v30 = vadd.f32 %v1573_v29, %v1979_v20  ;;  %v1115_v31 = vpop.f32.mrb[37].mxu1 }
 0x277   :  { %v1116_v32 = vadd.f32 %v1979_v20, %v1115_v31  ;;  %v1574_v33 = vpop.f32.mrb[38].mxu1 }
 0x278   :  { %1264 = vst [vmem:[#allocation12 + $0x130] sm:$0xff] %v1124_v30  ;;  %v1127_v34 = vadd.f32 %v1574_v33, %v1979_v20  ;;  %v1118_v35 = vpop.f32.mrb[39].mxu1 }
 0x279   :  { %1262 = vst [vmem:[#allocation12 + $0x120] sm:$0xff] %v1116_v32  ;;  %v1119_v36 = vadd.f32 %v1979_v20, %v1118_v35 }
 0x27a   :  { %1265 = vst [vmem:[#allocation12 + $0x138] sm:$0xff] %v1127_v34 }
 0x27b   :  { %1263 = vst [vmem:[#allocation12 + $0x128] sm:$0xff] %v1119_v36 }
 0x27d   :  { %v1577_v37 = vpop.f32.mrb[40].mxu1 }
 0x27e   :  { %v1140_v38 = vadd.f32 %v1577_v37, %v1979_v20  ;;  %v1131_v39 = vpop.f32.mrb[41].mxu1 }
 0x27f   :  { %v1132_v40 = vadd.f32 %v1979_v20, %v1131_v39  ;;  %v1578_v41 = vpop.f32.mrb[42].mxu1 }
 0x280   :  { %1268 = vst [vmem:[#allocation12 + $0x150] sm:$0xff] %v1140_v38  ;;  %v1143_v42 = vadd.f32 %v1578_v41, %v1979_v20  ;;  %v1134_v43 = vpop.f32.mrb[43].mxu1 }
 0x281   :  { %1266 = vst [vmem:[#allocation12 + $0x140] sm:$0xff] %v1132_v40  ;;  %v1135_v44 = vadd.f32 %v1979_v20, %v1134_v43 }
 0x282   :  { %1269 = vst [vmem:[#allocation12 + $0x158] sm:$0xff] %v1143_v42 }
 0x283   :  { %1267 = vst [vmem:[#allocation12 + $0x148] sm:$0xff] %v1135_v44 }
 0x285   :  { %v1581_v45 = vpop.f32.mrb[44].mxu1 }
 0x286   :  { %v1156_v46 = vadd.f32 %v1581_v45, %v1979_v20  ;;  %v1147_v47 = vpop.f32.mrb[45].mxu1 }
 0x287   :  { %v1148_v49 = vadd.f32 %v1979_v20, %v1147_v47  ;;  %v1582_v50 = vpop.f32.mrb[46].mxu1 }
 0x288   :  { %1272 = vst [vmem:[#allocation12 + $0x170] sm:$0xff] %v1156_v46  ;;  %v1159_v51 = vadd.f32 %v1582_v50, %v1979_v20  ;;  %v1150_v52 = vpop.f32.mrb[47].mxu1 }
 0x289   :  { %1270 = vst [vmem:[#allocation12 + $0x160] sm:$0xff] %v1148_v49  ;;  %v1151_v53 = vadd.f32 %v1979_v20, %v1150_v52 }
 0x28a   :  { %1273 = vst [vmem:[#allocation12 + $0x178] sm:$0xff] %v1159_v51 }
 0x28b   :  { %1271 = vst [vmem:[#allocation12 + $0x168] sm:$0xff] %v1151_v53 }
 0x28d   :  { %v1585_v54 = vpop.f32.mrb[48].mxu1 }
 0x28e   :  { %v1172_v55 = vadd.f32 %v1585_v54, %v1979_v20  ;;  %v1163_v56 = vpop.f32.mrb[49].mxu1 }
 0x28f   :  { %v1164_v57 = vadd.f32 %v1979_v20, %v1163_v56  ;;  %v1586_v58 = vpop.f32.mrb[50].mxu1 }
 0x290   :  { %1276 = vst [vmem:[#allocation12 + $0x190] sm:$0xff] %v1172_v55  ;;  %v1175_v59 = vadd.f32 %v1586_v58, %v1979_v20  ;;  %v1166_v60 = vpop.f32.mrb[51].mxu1 }
 0x291   :  { %1274 = vst [vmem:[#allocation12 + $0x180] sm:$0xff] %v1164_v57  ;;  %v1167_v61 = vadd.f32 %v1979_v20, %v1166_v60 }
 0x292   :  { %1277 = vst [vmem:[#allocation12 + $0x198] sm:$0xff] %v1175_v59 }
 0x293   :  { %1275 = vst [vmem:[#allocation12 + $0x188] sm:$0xff] %v1167_v61 }
 0x295   :  { %v1589_v62 = vpop.f32.mrb[52].mxu1 }
 0x296   :  { %v1188_v63 = vadd.f32 %v1589_v62, %v1979_v20  ;;  %v1179_v0 = vpop.f32.mrb[53].mxu1 }
 0x297   :  { %v1180_v1 = vadd.f32 %v1979_v20, %v1179_v0  ;;  %v1590_v2 = vpop.f32.mrb[54].mxu1 }
 0x298   :  { %1280 = vst [vmem:[#allocation12 + $0x1b0] sm:$0xff] %v1188_v63  ;;  %v1191_v3 = vadd.f32 %v1590_v2, %v1979_v20  ;;  %v1182_v4 = vpop.f32.mrb[55].mxu1 }
 0x299   :  { %1278 = vst [vmem:[#allocation12 + $0x1a0] sm:$0xff] %v1180_v1  ;;  %v1183_v5 = vadd.f32 %v1979_v20, %v1182_v4 }
 0x29a   :  { %1281 = vst [vmem:[#allocation12 + $0x1b8] sm:$0xff] %v1191_v3 }
 0x29b   :  { %1279 = vst [vmem:[#allocation12 + $0x1a8] sm:$0xff] %v1183_v5 }
 0x29d   :  { %v1593_v6 = vpop.f32.mrb[56].mxu1 }
 0x29e   :  { %v1204_v7 = vadd.f32 %v1593_v6, %v1979_v20  ;;  %v1195_v8 = vpop.f32.mrb[57].mxu1 }
 0x29f   :  { %v1196_v9 = vadd.f32 %v1979_v20, %v1195_v8  ;;  %v1594_v10 = vpop.f32.mrb[58].mxu1 }
 0x2a0   :  { %1284 = vst [vmem:[#allocation12 + $0x1d0] sm:$0xff] %v1204_v7  ;;  %v1207_v11 = vadd.f32 %v1594_v10, %v1979_v20  ;;  %v1198_v12 = vpop.f32.mrb[59].mxu1 }
 0x2a1   :  { %1282 = vst [vmem:[#allocation12 + $0x1c0] sm:$0xff] %v1196_v9  ;;  %v1199_v13 = vadd.f32 %v1979_v20, %v1198_v12 }
 0x2a2   :  { %1285 = vst [vmem:[#allocation12 + $0x1d8] sm:$0xff] %v1207_v11 }
 0x2a3   :  { %1283 = vst [vmem:[#allocation12 + $0x1c8] sm:$0xff] %v1199_v13 }
 0x2a5   :  { %v1597_v14 = vpop.f32.mrb[60].mxu1 }
 0x2a6   :  { %v1220_v15 = vadd.f32 %v1597_v14, %v1979_v20  ;;  %v1211_v16 = vpop.f32.mrb[61].mxu1 }
 0x2a7   :  { %v1212_v17 = vadd.f32 %v1979_v20, %v1211_v16  ;;  %v1598_v18 = vpop.f32.mrb[62].mxu1 }
 0x2a8   :  { %1288 = vst [vmem:[#allocation12 + $0x1f0] sm:$0xff] %v1220_v15  ;;  %v1223_v19 = vadd.f32 %v1598_v18, %v1979_v20  ;;  %v1214_v21 = vpop.f32.mrb[63].mxu1 }
 0x2a9   :  { %1286 = vst [vmem:[#allocation12 + $0x1e0] sm:$0xff] %v1212_v17  ;;  %v1215_v22 = vadd.f32 %v1979_v20, %v1214_v21 }
 0x2aa   :  { %1289 = vst [vmem:[#allocation12 + $0x1f8] sm:$0xff] %v1223_v19 }
 0x2ab   :  { %1287 = vst [vmem:[#allocation12 + $0x1e8] sm:$0xff] %v1215_v22 }
 0x2ac   :  { %1778 = shalt.err (!%p1775_p2)
}
 0x2ad   :  { %s1779_s7 = scalar_lea.hbm %s2062_s5, 8192 }
 0x2ae   :  { %p1780_p3 = scmp.ne.s32.totalorder %s2062_s5, %s1779_s7  ;;  %p1783_p4 = scmp.lt.u32.totalorder %s1779_s7, %s2062_s5 }
 0x2b0   :  { %p1785_p5 = pnand %p1783_p4, %p1780_p3 }
 0x2b2   :  { %1788 = shalt.err (!%p1785_p5)
}
 0x2b3   :  { %s1805_s12 = smov 128   ;;  %s1806_s13 = smov 8  }
 0x2b4   :  { %1301 = dma.vmem_to_hbm [thread:$0]  %s1296_s28, 8192, %s2062_s5, [#allocation5], %s1805_s12, %s1805_s12, %s1806_s13  }
 0x2b5   :  { %1795 = dma.done.wait [#allocation5], 8192  }
 0x2b6   :  { %1796 = vsyncadd [#allocation5], 4294959104 }
 0x2b7   :  { %1305 = vsyncpa [#allocation4], 1 }
 0x2b8   :  { %1306 = vsyncpa [#allocation7], 1 }
 0x2b9   :  { %1307 = vsyncpa [#allocation10], 1 }
 0x2ba   :  { %1308 = vsyncpa [#allocation5], 1 }

</bundles_post_ra>
